<compile_context>
chip_gen: v7x
topology: tpu7x:2x2x1
jax: 0.10.0
libtpu: 0.0.40
codegen_flags: <defaults>
</compile_context>

<pallas_src>
import functools

import jax
import jax.numpy as jnp
from jax.experimental import pallas as pl
from jax.experimental.pallas import tpu as pltpu


def _round_up(v, m):
    return (v + m - 1) // m * m


def _cdiv(a, b):
    return -(-a // b)


def _pad_axis(a, axis, target):
    if a.shape[axis] == target:
        return a
    widths = [(0, 0)] * a.ndim
    widths[axis] = (0, target - a.shape[axis])
    return jnp.pad(a, widths)


def _fold_bn(w, b, gamma, beta, mean, var, eps=1e-5):
    """Fold eval-mode BatchNorm1d into the preceding 1x1 conv.

    w: [Cout, Cin] (PyTorch Conv1d weight with the k=1 axis squeezed),
    b: [Cout]; BN params are per output channel.
    """
    scale = gamma / jnp.sqrt(var + eps)                 # [Cout]
    return w * scale[:, None], (b - mean) * scale + beta


def _effective_params(params, out_factor, use_tanh):
    """BN (eval-mode running stats) folded into conv1..3.  When there is no
    tanh, out_factor is folded into conv4 (kernel epilogue becomes cast+store).

    TODO(synk): training-mode BatchNorm (batch statistics) is not implemented;
    eval-mode running-stat BN is used instead.
    """
    w1, b1 = _fold_bn(params["w1"], params["b1"], *params["bn1"])
    w2, b2 = _fold_bn(params["w2"], params["b2"], *params["bn2"])
    w3, b3 = _fold_bn(params["w3"], params["b3"], *params["bn3"])
    w4, b4 = params["w4"], params["b4"]
    if use_tanh:
        scale = float(out_factor)          # applied after tanh in the kernel
    else:
        scale = None
        w4 = out_factor * w4
        b4 = out_factor * b4
    return (w1, b1, w2, b2, w3, b3, w4, b4), scale


def _choose_tile_and_vmem(C, Cp, C1p, C2p, C3p, N, B, tile_n_hint):
    """Generation-aware point-tile width + VMEM request (per TensorCore)."""
    try:
        cap = int(pltpu.get_tpu_info().vmem_capacity_bytes)
    except Exception:
        cap = 64 * 1024 * 1024          # conservative fallback: v7x per-TC
    headroom = 8 * 1024 * 1024          # Mosaic internal scratch / semaphores

    # Grid-invariant residents: whole-array VMEM specs bypass the pipeline, so
    # a SINGLE copy (no double-buffering) is budgeted here.
    w_bytes = 2 * (C1p * Cp + C2p * C1p + C3p * C2p + 8 * C3p)      # bf16
    b_bytes = 4 * 128 * (C1p + C2p + C3p + 8)                       # (Cout,1) f32
    fixed = w_bytes + b_bytes

    # Per point (per lane column): double-buffered f32 x tile, double-buffered
    # f32 out tile, bf16 x copy, per-layer f32 result + bf16 recast.
    per_col = (2 * _round_up(C, 8) * 4 + 2 * 8 * 4
               + Cp * 2 + (C1p + C2p + C3p) * 6 + 8 * 4)
    safety = 1.5

    budget = cap - headroom - fixed
    tn = max(128, min(4096, int(budget // int(per_col * safety))))
    if tile_n_hint is not None:
        tn = min(tn, max(128, int(tile_n_hint)))
    tn = min(tn, _round_up(N, 128))                 # never wider than N
    tn = tn // 256 * 256 if tn >= 256 else 128      # full MXU N-passes

    # Megacore guard (v7x: 2 TCs/chip): keep >= 2 parallel grid steps when the
    # workload allows it (B == 1 with N <= tn would idle one core).
    if B * _cdiv(N, tn) < 2 and N > 128:
        tn = max(128, _round_up(_cdiv(N, 2), 128))

    need = fixed + per_col * tn
    vmem_limit = int(min(cap - headroom,
                         max(int(safety * need), 32 * 1024 * 1024)))
    return tn, vmem_limit


def _pointgencon_kernel(x_ref, w1_ref, b1_ref, w2_ref, b2_ref,
                        w3_ref, b3_ref, w4_ref, b4_ref, o_ref,
                        *, scale, use_tanh, cin_pad):
    # x arrives as f32; cast (and, if C is not 128-aligned, K-pad) in VMEM so
    # the wrapper never does a separate full-HBM cast/pad pass.  The extra
    # 2 B/elem of f32 DMA is hidden — the kernel is MXU-bound.
    x = x_ref[0].astype(jnp.bfloat16)                       # [C, tn]
    if cin_pad:
        x = jnp.pad(x, ((0, cin_pad), (0, 0)))              # [Cp, tn]

    # NOTE(v5e): bias-add / ReLU / bf16 recast should fuse onto the MXU result
    # pop path; if a bundle dump shows an f32 VMEM round-trip, process in
    # 256-column sub-tiles with lax.fori_loop(unroll=True).
    h = jnp.dot(w1_ref[...], x, preferred_element_type=jnp.float32)
    h = jnp.maximum(h + b1_ref[...], 0.0).astype(jnp.bfloat16)      # [C1p, tn]
    h = jnp.dot(w2_ref[...], h, preferred_element_type=jnp.float32)
    h = jnp.maximum(h + b2_ref[...], 0.0).astype(jnp.bfloat16)      # [C2p, tn]
    h = jnp.dot(w3_ref[...], h, preferred_element_type=jnp.float32)
    h = jnp.maximum(h + b3_ref[...], 0.0).astype(jnp.bfloat16)      # [C3p, tn]
    h = jnp.dot(w4_ref[...], h, preferred_element_type=jnp.float32)
    h = h + b4_ref[...]                                              # [3, tn]
    if use_tanh:
        h = jnp.tanh(h)
    if scale is not None:        # only when use_tanh (else folded into w4/b4)
        h = scale * h
    o_ref[0] = h.astype(o_ref.dtype)


def pointgencon_forward(x_ncw, params, *, out_factor=200.0, use_tanh=False,
                        tile_n=None, channel_align=128):
    """x_ncw: [B, C, N] float32 (PyTorch NCW).  Returns [B, 3, N] float32."""
    B, C, N = x_ncw.shape
    (w1, b1, w2, b2, w3, b3, w4, b4), scale = _effective_params(
        params, out_factor, use_tanh)

    C1, C2, C3, C4 = w1.shape[0], w2.shape[0], w3.shape[0], w4.shape[0]
    Cp = _round_up(C, channel_align)
    C1p = _round_up(C1, channel_align)
    C2p = _round_up(C2, channel_align)
    C3p = _round_up(C3, channel_align)

    # Zero-pad Cout AND Cin of each layer for lane / MXU-tile alignment.
    # bf16 weights (MXU operands), f32 (Cout, 1) biases.  Padding is inert.
    w1p = _pad_axis(_pad_axis(w1, 0, C1p), 1, Cp).astype(jnp.bfloat16)   # [C1p, Cp]
    w2p = _pad_axis(_pad_axis(w2, 0, C2p), 1, C1p).astype(jnp.bfloat16)  # [C2p, C1p]
    w3p = _pad_axis(_pad_axis(w3, 0, C3p), 1, C2p).astype(jnp.bfloat16)  # [C3p, C2p]
    w4p = _pad_axis(w4, 1, C3p).astype(jnp.bfloat16)                     # [C4,  C3p]
    # TODO(synk): on v7x, fp8 weight storage (per-channel scaled) would halve
    # the resident-weight VMEM; kept bf16 here for accuracy.
    b1p = _pad_axis(b1, 0, C1p).reshape(C1p, 1).astype(jnp.float32)
    b2p = _pad_axis(b2, 0, C2p).reshape(C2p, 1).astype(jnp.float32)
    b3p = _pad_axis(b3, 0, C3p).reshape(C3p, 1).astype(jnp.float32)
    b4p = b4.reshape(C4, 1).astype(jnp.float32)

    tn, vmem_limit = _choose_tile_and_vmem(C, Cp, C1p, C2p, C3p, N, B, tile_n)
    n_tiles = _cdiv(N, tn)
    grid = (B, n_tiles)

    kernel = functools.partial(_pointgencon_kernel,
                               scale=scale, use_tanh=bool(use_tanh),
                               cin_pad=Cp - C)

    # Grid-invariant parameters: whole-array VMEM residents (single copy,
    # outside the double-buffered input/output pipeline).
    vmem_res = pl.BlockSpec(memory_space=pltpu.MemorySpace.VMEM)

    flops = 2 * B * n_tiles * tn * (Cp * C1p + C1p * C2p + C2p * C3p + C3p * C4)
    bytes_accessed = (B * C * N * 4                                      # x f32
                      + 2 * (C1p * Cp + C2p * C1p + C3p * C2p + C4 * C3p)  # w bf16
                      + 4 * (C1p + C2p + C3p + C4)                       # biases
                      + B * C4 * N * 4)                                  # out f32
    cost = pl.CostEstimate(
        flops=int(flops),
        transcendentals=int(B * n_tiles * tn * C4) if use_tanh else 0,
        bytes_accessed=int(bytes_accessed))

    out = pl.pallas_call(
        kernel,
        out_shape=jax.ShapeDtypeStruct((B, C4, N), jnp.float32),
        grid_spec=pltpu.PrefetchScalarGridSpec(
            num_scalar_prefetch=0,
            grid=grid,
            in_specs=[
                pl.BlockSpec((1, C, tn), lambda b, j: (b, 0, j)),   # x tile f32
                vmem_res, vmem_res,      # w1 (BN folded), b1
                vmem_res, vmem_res,      # w2, b2
                vmem_res, vmem_res,      # w3, b3
                vmem_res, vmem_res,      # w4 (out_factor folded if no tanh), b4
            ],
            out_specs=pl.BlockSpec((1, C4, tn), lambda b, j: (b, 0, j)),
        ),
        compiler_params=pltpu.CompilerParams(
            dimension_semantics=("parallel", "parallel"),
            vmem_limit_bytes=vmem_limit),
        cost_estimate=cost,
    )(x_ncw, w1p, b1p, w2p, b2p, w3p, b3p, w4p, b4p)

    return out                                          # [B, 3, N]


def make_params(key, bottleneck):
    """Deterministic synthetic parameters matching PointGenCon shapes.

    Conv1d weights in PyTorch are [Cout, Cin, 1]; stored here as [Cout, Cin].
    """
    c = bottleneck
    c2, c3 = c // 2, c // 4
    keys = jax.random.split(key, 8)

    def w(k, cin, cout):
        return (jax.random.normal(k, (cout, cin), jnp.float32)
                / jnp.sqrt(jnp.float32(cin)))

    def bn(k, ch):
        kg, kb, km, kv = jax.random.split(k, 4)
        gamma = 1.0 + 0.1 * jax.random.normal(kg, (ch,), jnp.float32)
        beta = 0.1 * jax.random.normal(kb, (ch,), jnp.float32)
        mean = 0.1 * jax.random.normal(km, (ch,), jnp.float32)
        var = jnp.abs(1.0 + 0.1 * jax.random.normal(kv, (ch,), jnp.float32))
        return (gamma, beta, mean, var)

    return {
        "w1": w(keys[0], c, c),   "b1": 0.01 * jax.random.normal(keys[4], (c,), jnp.float32),
        "w2": w(keys[1], c, c2),  "b2": 0.01 * jax.random.normal(keys[5], (c2,), jnp.float32),
        "w3": w(keys[2], c2, c3), "b3": 0.01 * jax.random.normal(keys[6], (c3,), jnp.float32),
        "w4": w(keys[3], c3, 3),  "b4": 0.01 * jax.random.normal(keys[7], (3,), jnp.float32),
        "bn1": bn(jax.random.fold_in(key, 101), c),
        "bn2": bn(jax.random.fold_in(key, 102), c2),
        "bn3": bn(jax.random.fold_in(key, 103), c3),
    }


def _reference(x_ncw, params, out_factor=200.0, use_tanh=False):
    """Pure-JAX reference using the SAME effective (BN/out_factor-folded)
    parameters and the same bf16-operand / f32-accumulation quantization as
    the kernel, so only accumulation-order noise remains."""
    (w1, b1, w2, b2, w3, b3, w4, b4), scale = _effective_params(
        params, out_factor, use_tanh)
    q = lambda a: a.astype(jnp.bfloat16).astype(jnp.float32)

    def lin(w, b, h):
        return jnp.einsum("oc,bcn->bon", q(w), h,
                          preferred_element_type=jnp.float32) + b[None, :, None]

    h = q(x_ncw)
    h = q(jnp.maximum(lin(w1, b1, h), 0.0))
    h = q(jnp.maximum(lin(w2, b2, h), 0.0))
    h = q(jnp.maximum(lin(w3, b3, h), 0.0))
    h = lin(w4, b4, h)
    if use_tanh:
        h = jnp.tanh(h)
    if scale is not None:
        h = scale * h
    return h


def _check(name, *, B, C, N, use_tanh, out_factor, key):
    kx, kp = jax.random.split(key)
    x = jax.random.normal(kx, (B, C, N), jnp.float32)    # NCW, like PyTorch
    params = make_params(kp, C)

    out = pointgencon_forward(x, params, out_factor=out_factor,
                              use_tanh=use_tanh)
    out = jax.block_until_ready(out)
    ref = _reference(x, params, out_factor=out_factor, use_tanh=use_tanh)

    assert out.shape == (B, 3, N), (name, out.shape)
    err = float(jnp.max(jnp.abs(out - ref)))
    ref_scale = float(jnp.max(jnp.abs(ref)))
    # Kernel and reference both use bf16 MXU operands with f32 accumulation;
    # residual differences come from accumulation-order-induced flips of the
    # bf16 rounding of intermediates, amplified by out_factor, so the bound is
    # scale-relative (a real kernel bug produces errors ~ ref_scale).
    tol = 0.04 * max(ref_scale, 1.0) + 1.0
    assert err <= tol, f"{name}: max abs err {err:.4f} > tol {tol:.4f}"


if __name__ == "__main__":
    key = jax.random.PRNGKey(0)
    k1, k2 = jax.random.split(key)

    # Small synthetic configs (module default bottleneck_size=2500 is shrunk).
    _check("plain", B=2, C=256, N=128, use_tanh=False, out_factor=200.0, key=k1)
    # Exercises: B=1 megacore tile guard, ragged N (cdiv grid), tanh epilogue,
    # and padded hidden channels (C/2=64, C/4=32 -> padded to 128).
    _check("tanh_ragged", B=1, C=128, N=200, use_tanh=True, out_factor=200.0,
           key=k2)

    print("KERNEL_OK")
</pallas_src>

<mosaic_0001>
module attributes {stable_mosaic.version = 11 : i64} {
  func.func @_pointgencon_kernel(%arg0: i32, %arg1: i32, %arg2: memref<1x256x128xf32, #tpu.memory_space<vmem>>, %arg3: memref<256x256xbf16, #tpu.memory_space<vmem>>, %arg4: memref<256x1xf32, #tpu.memory_space<vmem>>, %arg5: memref<128x256xbf16, #tpu.memory_space<vmem>>, %arg6: memref<128x1xf32, #tpu.memory_space<vmem>>, %arg7: memref<128x128xbf16, #tpu.memory_space<vmem>>, %arg8: memref<128x1xf32, #tpu.memory_space<vmem>>, %arg9: memref<3x128xbf16, #tpu.memory_space<vmem>>, %arg10: memref<3x1xf32, #tpu.memory_space<vmem>>, %arg11: memref<1x3x128xf32, #tpu.memory_space<vmem>>) attributes {dimension_semantics = [#tpu.dimension_semantics<parallel>, #tpu.dimension_semantics<parallel>], iteration_bounds = array<i64: 2, 1>, scalar_prefetch = 0 : i64, scratch_operands = 0 : i64, tpu.core_type = #tpu.core_type<tc>, window_params = [{transform_indices = @transform_0, window_bounds = array<i64: 1, 256, 128>}, {pipeline_mode = #tpu.pipeline_mode<synchronous>, transform_indices = @transform_1, window_bounds = array<i64: 256, 256>}, {pipeline_mode = #tpu.pipeline_mode<synchronous>, transform_indices = @transform_2, window_bounds = array<i64: 256, 1>}, {pipeline_mode = #tpu.pipeline_mode<synchronous>, transform_indices = @transform_3, window_bounds = array<i64: 128, 256>}, {pipeline_mode = #tpu.pipeline_mode<synchronous>, transform_indices = @transform_4, window_bounds = array<i64: 128, 1>}, {pipeline_mode = #tpu.pipeline_mode<synchronous>, transform_indices = @transform_5, window_bounds = array<i64: 128, 128>}, {pipeline_mode = #tpu.pipeline_mode<synchronous>, transform_indices = @transform_6, window_bounds = array<i64: 128, 1>}, {pipeline_mode = #tpu.pipeline_mode<synchronous>, transform_indices = @transform_7, window_bounds = array<i64: 3, 128>}, {pipeline_mode = #tpu.pipeline_mode<synchronous>, transform_indices = @transform_8, window_bounds = array<i64: 3, 1>}, {transform_indices = @transform_9, window_bounds = array<i64: 1, 3, 128>}]} {
    %c0 = arith.constant 0 : index
    %c0_0 = arith.constant 0 : index
    %c0_1 = arith.constant 0 : index
    %0 = vector.load %arg2[%c0, %c0_0, %c0_1] : memref<1x256x128xf32, #tpu.memory_space<vmem>>, vector<1x256x128xf32>
    %1 = vector.shape_cast %0 : vector<1x256x128xf32> to vector<256x128xf32>
    %2 = arith.truncf %1 : vector<256x128xf32> to vector<256x128xbf16>
    %c0_2 = arith.constant 0 : index
    %c0_3 = arith.constant 0 : index
    %3 = vector.load %arg3[%c0_2, %c0_3] : memref<256x256xbf16, #tpu.memory_space<vmem>>, vector<256x256xbf16>
    %cst = arith.constant dense<0.000000e+00> : vector<256x128xf32>
    %4 = tpu.matmul %3, %2, %cst {dimension_numbers = #tpu.dot_dimension_numbers<[1], [0], [0], [1], [0, 0, 1, 1], [], []>} : vector<256x256xbf16>, vector<256x128xbf16>, vector<256x128xf32> -> vector<256x128xf32>
    %c0_4 = arith.constant 0 : index
    %c0_5 = arith.constant 0 : index
    %5 = vector.load %arg4[%c0_4, %c0_5] : memref<256x1xf32, #tpu.memory_space<vmem>>, vector<256x1xf32>
    %6 = vector.broadcast %5 : vector<256x1xf32> to vector<256x128xf32>
    %7 = arith.addf %4, %6 : vector<256x128xf32>
    %cst_6 = arith.constant 0.000000e+00 : f32
    %8 = vector.broadcast %cst_6 : f32 to vector<256x128xf32>
    %9 = arith.maximumf %7, %8 : vector<256x128xf32>
    %10 = arith.truncf %9 : vector<256x128xf32> to vector<256x128xbf16>
    %c0_7 = arith.constant 0 : index
    %c0_8 = arith.constant 0 : index
    %11 = vector.load %arg5[%c0_7, %c0_8] : memref<128x256xbf16, #tpu.memory_space<vmem>>, vector<128x256xbf16>
    %cst_9 = arith.constant dense<0.000000e+00> : vector<128x128xf32>
    %12 = tpu.matmul %11, %10, %cst_9 {dimension_numbers = #tpu.dot_dimension_numbers<[1], [0], [0], [1], [0, 0, 1, 1], [], []>} : vector<128x256xbf16>, vector<256x128xbf16>, vector<128x128xf32> -> vector<128x128xf32>
    %c0_10 = arith.constant 0 : index
    %c0_11 = arith.constant 0 : index
    %13 = vector.load %arg6[%c0_10, %c0_11] : memref<128x1xf32, #tpu.memory_space<vmem>>, vector<128x1xf32>
    %14 = vector.broadcast %13 : vector<128x1xf32> to vector<128x128xf32>
    %15 = arith.addf %12, %14 : vector<128x128xf32>
    %cst_12 = arith.constant 0.000000e+00 : f32
    %16 = vector.broadcast %cst_12 : f32 to vector<128x128xf32>
    %17 = arith.maximumf %15, %16 : vector<128x128xf32>
    %18 = arith.truncf %17 : vector<128x128xf32> to vector<128x128xbf16>
    %c0_13 = arith.constant 0 : index
    %c0_14 = arith.constant 0 : index
    %19 = vector.load %arg7[%c0_13, %c0_14] : memref<128x128xbf16, #tpu.memory_space<vmem>>, vector<128x128xbf16>
    %cst_15 = arith.constant dense<0.000000e+00> : vector<128x128xf32>
    %20 = tpu.matmul %19, %18, %cst_15 {dimension_numbers = #tpu.dot_dimension_numbers<[1], [0], [0], [1], [0, 0, 1, 1], [], []>} : vector<128x128xbf16>, vector<128x128xbf16>, vector<128x128xf32> -> vector<128x128xf32>
    %c0_16 = arith.constant 0 : index
    %c0_17 = arith.constant 0 : index
    %21 = vector.load %arg8[%c0_16, %c0_17] : memref<128x1xf32, #tpu.memory_space<vmem>>, vector<128x1xf32>
    %22 = vector.broadcast %21 : vector<128x1xf32> to vector<128x128xf32>
    %23 = arith.addf %20, %22 : vector<128x128xf32>
    %cst_18 = arith.constant 0.000000e+00 : f32
    %24 = vector.broadcast %cst_18 : f32 to vector<128x128xf32>
    %25 = arith.maximumf %23, %24 : vector<128x128xf32>
    %26 = arith.truncf %25 : vector<128x128xf32> to vector<128x128xbf16>
    %c0_19 = arith.constant 0 : index
    %c0_20 = arith.constant 0 : index
    %27 = vector.load %arg9[%c0_19, %c0_20] : memref<3x128xbf16, #tpu.memory_space<vmem>>, vector<3x128xbf16>
    %cst_21 = arith.constant dense<0.000000e+00> : vector<3x128xf32>
    %28 = tpu.matmul %27, %26, %cst_21 {dimension_numbers = #tpu.dot_dimension_numbers<[1], [0], [0], [1], [0, 0, 1, 1], [], []>} : vector<3x128xbf16>, vector<128x128xbf16>, vector<3x128xf32> -> vector<3x128xf32>
    %c0_22 = arith.constant 0 : index
    %c0_23 = arith.constant 0 : index
    %29 = vector.load %arg10[%c0_22, %c0_23] : memref<3x1xf32, #tpu.memory_space<vmem>>, vector<3x1xf32>
    %30 = vector.broadcast %29 : vector<3x1xf32> to vector<3x128xf32>
    %31 = arith.addf %28, %30 : vector<3x128xf32>
    %c0_24 = arith.constant 0 : index
    %c0_25 = arith.constant 0 : index
    %c0_26 = arith.constant 0 : index
    %32 = vector.load %arg11[%c0_24, %c0_25, %c0_26] : memref<1x3x128xf32, #tpu.memory_space<vmem>>, vector<1x3x128xf32>
    %33 = vector.shape_cast %32 : vector<1x3x128xf32> to vector<3x128xf32>
    %34 = vector.shape_cast %31 : vector<3x128xf32> to vector<1x3x128xf32>
    tpu.vector_store %arg11[%c0_24, %c0_25, %c0_26], %34 {strides = array<i32>} : memref<1x3x128xf32, #tpu.memory_space<vmem>>, vector<1x3x128xf32>,
    return
  }
  func.func @transform_0(%arg0: i32, %arg1: i32) -> (i32, i32, i32) {
    %c0_i32 = arith.constant 0 : i32
    %c0_i32_0 = arith.constant 0 : i32
    return %arg0, %c0_i32, %arg1 : i32, i32, i32
  }
  func.func @transform_1(%arg0: i32, %arg1: i32) -> (i32, i32) {
    %c0_i32 = arith.constant 0 : i32
    %c0_i32_0 = arith.constant 0 : i32
    %c0_i32_1 = arith.constant 0 : i32
    return %c0_i32, %c0_i32_0 : i32, i32
  }
  func.func @transform_2(%arg0: i32, %arg1: i32) -> (i32, i32) {
    %c0_i32 = arith.constant 0 : i32
    %c0_i32_0 = arith.constant 0 : i32
    %c0_i32_1 = arith.constant 0 : i32
    return %c0_i32, %c0_i32_0 : i32, i32
  }
  func.func @transform_3(%arg0: i32, %arg1: i32) -> (i32, i32) {
    %c0_i32 = arith.constant 0 : i32
    %c0_i32_0 = arith.constant 0 : i32
    %c0_i32_1 = arith.constant 0 : i32
    return %c0_i32, %c0_i32_0 : i32, i32
  }
  func.func @transform_4(%arg0: i32, %arg1: i32) -> (i32, i32) {
    %c0_i32 = arith.constant 0 : i32
    %c0_i32_0 = arith.constant 0 : i32
    %c0_i32_1 = arith.constant 0 : i32
    return %c0_i32, %c0_i32_0 : i32, i32
  }
  func.func @transform_5(%arg0: i32, %arg1: i32) -> (i32, i32) {
    %c0_i32 = arith.constant 0 : i32
    %c0_i32_0 = arith.constant 0 : i32
    %c0_i32_1 = arith.constant 0 : i32
    return %c0_i32, %c0_i32_0 : i32, i32
  }
  func.func @transform_6(%arg0: i32, %arg1: i32) -> (i32, i32) {
    %c0_i32 = arith.constant 0 : i32
    %c0_i32_0 = arith.constant 0 : i32
    %c0_i32_1 = arith.constant 0 : i32
    return %c0_i32, %c0_i32_0 : i32, i32
  }
  func.func @transform_7(%arg0: i32, %arg1: i32) -> (i32, i32) {
    %c0_i32 = arith.constant 0 : i32
    %c0_i32_0 = arith.constant 0 : i32
    %c0_i32_1 = arith.constant 0 : i32
    return %c0_i32, %c0_i32_0 : i32, i32
  }
  func.func @transform_8(%arg0: i32, %arg1: i32) -> (i32, i32) {
    %c0_i32 = arith.constant 0 : i32
    %c0_i32_0 = arith.constant 0 : i32
    %c0_i32_1 = arith.constant 0 : i32
    return %c0_i32, %c0_i32_0 : i32, i32
  }
  func.func @transform_9(%arg0: i32, %arg1: i32) -> (i32, i32, i32) {
    %c0_i32 = arith.constant 0 : i32
    %c0_i32_0 = arith.constant 0 : i32
    return %arg0, %c0_i32, %arg1 : i32, i32, i32
  }
}

</mosaic_0001>

<bundles_post_ra>
// kernel: tpu_custom_call.1
= control target key start
LH: loop header
LB: loop body
LE: loop exit
PB: predicated region body
PF: predicated region fallthrough
CT: control target
= control target key end

     0   :  { %14 = vsyncpa [#allocation3], 0  ;;  %s2899_s0 = inlined_call_operand.vmem [shape: f32[2,256,128], index: 0, kind: input, shape index: {}]   ;;  %s2900_s1 = inlined_call_operand.hbm [shape: bf16[256,256], index: 1, kind: input, shape index: {}]   ;;  %s2901_s2 = inlined_call_operand.vmem [shape: f32[256,1], index: 2, kind: input, shape index: {}]   ;;  %s2902_s3 = inlined_call_operand.hbm [shape: bf16[128,256], index: 3, kind: input, shape index: {}]   ;;  %s2903_s4 = inlined_call_operand.vmem [shape: f32[128,1], index: 4, kind: input, shape index: {}]   ;;  %s2904_s5 = inlined_call_operand.hbm [shape: bf16[128,128], index: 5, kind: input, shape index: {}]   ;;  %s2905_s6 = inlined_call_operand.vmem [shape: f32[128,1], index: 6, kind: input, shape index: {}]   ;;  %s2906_s7 = inlined_call_operand.vmem [shape: bf16[3,128], index: 7, kind: input, shape index: {}]   ;;  %s2907_s8 = inlined_call_operand.vmem [shape: f32[3,1], index: 8, kind: input, shape index: {}]   ;;  %s2908_s9 = inlined_call_operand.vmem [shape: f32[2,3,128], index: 9, kind: output, shape index: {}]  }
   0x1   :  { %15 = vsyncpa [#allocation5], 0  ;;  %s2445_s30 = smov 0   ;;  %s2447_s10 = smov 0  }
   0x2   :  { %s2449_s11 = smov 0  }
   0x3 LB: > { %2913 = sst [smem:[#allocation9_spill]] %s2379_s10  ;;  %s1799_s12 = sadd.s32 4294967295, %s2383_s11   ;;  %s2383_s11 = sphi %s2449_s11, %s21_s11   ;;  %s2379_s10 = sphi %s2447_s10, %s2922_s10   ;;  %s2375_s30 = sphi %s2445_s30, %s2921_s30  }
   0x4   : > { %p1801_p0 = scmp.ge.s32.totalorder %s2383_s11, 1  ;;  %p262_p1 = scmp.lt.s32.totalorder %s2383_s11, 3 }
   0x5   : > { %p2463_p2 = scmp.eq.s32.totalorder %s1799_s12, 0  ;;  %s2385_s15 = smov [#allocation4]  }
   0x6   : > { %p2467_p3 = pnand %p1801_p0, %p262_p1  ;;  %s290_s16 = sshll.u32 %s2385_s15, 4  ;;  %s2471_s16 = int_to_ptr.vmem [resolvable:$true] %s290_s16 }
   0x7   : > { %s2914_s13 = scalar_select %p2463_p2, 1, 0 }
   0x8   : > { %s2915_s14 = scalar_select %p2467_p3, 1, 0 }
   0x9   : > { %p2137_p4 = pneg %p2467_p3  ;;  %s33_s18 = sadd.s32 1, %s2379_s10 }
   0xa   : > { %p2482_p6 = scmp.ge.s32.totalorder %s33_s18, 2  ;;  %s2386_s20 = smov [#allocation2]  }
   0xb   : > { %p2477_p5 = pnand %p2463_p2, %p2137_p4  ;;  %s274_s21 = sshll.u32 %s2386_s20, 4  ;;  %s275_s21 = int_to_ptr.vmem [resolvable:$true] %s274_s21 }
   0xc   : > { %s2269_s24 = scalar_lea.hbm %s2902_s3, 2048 }
   0xd   : > { %p2270_p7 = scmp.ne.s32.totalorder %s2902_s3, %s2269_s24  ;;  %p2494_p8 = pneg %p2477_p5 }
   0xe   : > { %p2276_p11 = scmp.lt.u32.totalorder %s2269_s24, %s2902_s3 }
   0xf   : > { %p2272_p9 = pnand %p2494_p8, %p2270_p7 }
  0x11   : > { %p2273_p10 = pneg %p2272_p9 }
  0x13   : > { %p2278_p12 = pnand %p2276_p11, %p2273_p10 }
  0x15   : > { %2281 = shalt.err (!%p2278_p12)
}
  0x16   : > { %s2282_s12 = scalar_lea.vmem %s2471_s16, 2048  ;;  %p2290_p4 = scmp.lt.s32.totalorder %s2471_s16, %s2471_s16 }
  0x17   : > { %p2283_p13 = scmp.ne.s32.totalorder %s2471_s16, %s2282_s12  ;;  %p2291_p2 = scmp.lt.s32.totalorder %s2282_s12, %s2282_s12 }
  0x19   : > { %p2285_p0 = pnand %p2283_p13, %p2494_p8  ;;  %p2292_p7 = por %p2291_p2, %p2290_p4 }
  0x1b   : > { %p2286_p1 = pneg %p2285_p0 }
  0x1d   : > { %p2293_p9 = pnand %p2292_p7, %p2286_p1 }
  0x1f   : > { %2296 = shalt.err (!%p2293_p9)
}
  0x20   : > { %s2387_s15 = smov 128   ;;  %s2388_s20 = smov 8  }
  0x21   : > { %2143 = dma.hbm_to_vmem [thread:$0]  (!%p2477_p5), %s2902_s3, 2048, %s2471_s16, [#allocation5], %s2387_s15, %s2387_s15, %s2388_s20  }
  0x22   : > { %s2924_s18 = smov (%p2482_p6, %s33_s18), 0  ;;  %s2297_s26 = scalar_lea.hbm %s2900_s1, 4096 }
  0x23   : > { %p2298_p2 = scmp.ne.s32.totalorder %s2900_s1, %s2297_s26  ;;  %p2304_p12 = scmp.lt.u32.totalorder %s2297_s26, %s2900_s1 }
  0x25   : > { %p2300_p10 = pnand %p2298_p2, %p2494_p8 }
  0x27   : > { %p2301_p11 = pneg %p2300_p10 }
  0x29   : > { %p2306_p13 = pnand %p2304_p12, %p2301_p11 }
  0x2b   : > { %2309 = shalt.err (!%p2306_p13)
}
  0x2c   : > { %s2310_s16 = scalar_lea.vmem %s275_s21, 4096  ;;  %p2318_p4 = scmp.lt.s32.totalorder %s275_s21, %s275_s21 }
  0x2d   : > { %p2311_p6 = scmp.ne.s32.totalorder %s275_s21, %s2310_s16  ;;  %p2319_p7 = scmp.lt.s32.totalorder %s2310_s16, %s2310_s16 }
  0x2f   : > { %p2313_p0 = pnand %p2311_p6, %p2494_p8  ;;  %p2320_p9 = por %p2319_p7, %p2318_p4 }
  0x31   : > { %p2314_p1 = pneg %p2313_p0 }
  0x33   : > { %p2321_p3 = pnand %p2320_p9, %p2314_p1 }
  0x35   : > { %2324 = shalt.err (!%p2321_p3)
}
  0x36   : > { %2140 = dma.hbm_to_vmem [thread:$0]  (!%p2477_p5), %s2900_s1, 4096, %s275_s21, [#allocation3], %s2387_s15, %s2387_s15, %s2388_s20  }
  0x37   : > { %s2389_s10 = smov [#allocation6]   ;;  %s2325_s26 = scalar_lea.hbm %s2904_s5, 1024 }
  0x38   : > { %s306_s23 = sshll.u32 %s2389_s10, 4  ;;  %p2326_p2 = scmp.ne.s32.totalorder %s2904_s5, %s2325_s26  ;;  %s307_s23 = int_to_ptr.vmem [resolvable:$true] %s306_s23 }
  0x39   : > { %p2332_p11 = scmp.lt.u32.totalorder %s2325_s26, %s2904_s5 }
  0x3a   : > { %p2328_p3 = pnand %p2326_p2, %p2494_p8 }
  0x3c   : > { %p2329_p10 = pneg %p2328_p3 }
  0x3e   : > { %p2334_p12 = pnand %p2332_p11, %p2329_p10 }
  0x40   : > { %2337 = shalt.err (!%p2334_p12)
}
  0x41   : > { %s2338_s21 = scalar_lea.vmem %s307_s23, 1024  ;;  %p2346_p1 = scmp.lt.s32.totalorder %s307_s23, %s307_s23 }
  0x42   : > { %p2339_p13 = scmp.ne.s32.totalorder %s307_s23, %s2338_s21  ;;  %p2347_p4 = scmp.lt.s32.totalorder %s2338_s21, %s2338_s21 }
  0x44   : > { %p2341_p6 = pnand %p2339_p13, %p2494_p8  ;;  %p2348_p7 = por %p2347_p4, %p2346_p1 }
  0x46   : > { %p2342_p0 = pneg %p2341_p6 }
  0x48   : > { %p2349_p9 = pnand %p2348_p7, %p2342_p0 }
  0x4a   : > { %2352 = shalt.err (!%p2349_p9)
}
  0x4b   : > { %s2390_s15 = smov 64   ;;  %s2391_s20 = smov 4  }
  0x4c   : > { %2146 = dma.hbm_to_vmem [thread:$0]  (!%p2477_p5), %s2904_s5, 1024, %s307_s23, [#allocation5], %s2390_s15, %s2390_s15, %s2391_s20  }
  0x4d   : > { %p2919_p2 = scmp.ne.s32.totalorder %s2915_s14, 0 }
  0x4e   : > { %p2920_p3 = scmp.ne.s32.totalorder (!%p2919_p2), %s2914_s13, 0 }
  0x4f   : > { %342 = sbr.rel (%p2919_p2) target bundleno = 1226 (0x4ca), region = 56 }
  0x56   : > { %2366 = dma.done.wait (%p2920_p3), [#allocation3], 4096  }
  0x57   : > { %2368 = vsyncadd (%p2920_p3), [#allocation3], 4294963200 }
  0x58   : > { %2370 = dma.done.wait (%p2920_p3), [#allocation5], 3072  }
  0x59   : > { %2372 = vsyncadd (%p2920_p3), [#allocation5], 4294964224  ;;  %p391_p8 = scmp.lt.s32.totalorder %s2375_s30, 1  ;;  %v2392_v0 = vmov 0   ;;  %v2191_v26 = vld [vmem:[#allocation2 + $0x4] ss:$8 sps:$4 sm:$0xff]  }
  0x5a   : > { %2187 = vset.pattern.permute.xlu0 %v2392_v0  ;;  %2188 = vset.pattern.permute.xlu1 %v2392_v0  ;;  %v503_v33 = vld [vmem:[%s2901_s2 + $0x80] sm:$0xff]  ;;  %v504_v36 = vld [vmem:[%s2901_s2 + $0x88] sm:$0xff]  ;;  %v505_v44 = vld [vmem:[%s2901_s2 + $0x90] sm:$0xff]  ;;  %vm2394_vm0 = vmmov 0  }
  0x5b   : > { %s2926_s30 = smov (!%p391_p8, %s2375_s30), 1  ;;  %871 = vmatprep.mubr.bf16.mxu0 %v2191_v26  ;;  %601 = vperm.xlu0 %2187, %v503_v33   ;;  %v487_v37 = vld [vmem:[%s2901_s2] sm:$0xff]  ;;  %v488_v42 = vld [vmem:[%s2901_s2 + $0x8] sm:$0xff]  ;;  %v506_v50 = vld [vmem:[%s2901_s2 + $0x98] sm:$0xff] }
  0x5c   : > { %s1871_s14 = sshll.u32 %s2926_s30, 8  ;;  %521 = vperm.xlu1 %2188, %v487_v37   ;;  %v489_v52 = vld [vmem:[%s2901_s2 + $0x10] sm:$0xff]  ;;  %v490_v56 = vld [vmem:[%s2901_s2 + $0x18] sm:$0xff]  ;;  %v507_v58 = vld [vmem:[%s2901_s2 + $0xa0] sm:$0xff]  ;;  %s1812_s29 = sshll.u32 %s2926_s30, 2 }
  0x5d   : > { %s2573_s10 = scalar_lea.vmem %s2899_s0, %s1871_s14  ;;  %v508_v59 = vld [vmem:[%s2901_s2 + $0xa8] sm:$0xff]  ;;  %v2192_v61 = vld [vmem:[#allocation2 + $0x14] ss:$8 sps:$4 sm:$0xff]   ;;  %v491_v62 = vld [vmem:[%s2901_s2 + $0x20] sm:$0xff]  ;;  %s405_s21 = scalar_lea.vmem %s2908_s9, %s1812_s29 }
  0x5e   : > { %v423_v1 = vld [vmem:[%s2573_s10 + $0x80] sm:$0xff]  ;;  %v424_v2 = vld [vmem:[%s2573_s10 + $0x88] sm:$0xff]  ;;  %v425_v6 = vld [vmem:[%s2573_s10 + $0x90] sm:$0xff] }
  0x5f   : > { %v407_v3 = vld [vmem:[%s2573_s10] sm:$0xff]  ;;  %v447_v4 = vpack.c.bf16 %v424_v2, %v423_v1  ;;  %v408_v5 = vld [vmem:[%s2573_s10 + $0x8] sm:$0xff]  ;;  %v426_v7 = vld [vmem:[%s2573_s10 + $0x98] sm:$0xff]  ;;  %606 = vperm.xlu0 %2187, %v504_v36  }
  0x60   : > { %v439_v8 = vpack.c.bf16 %v408_v5, %v407_v3  ;;  %v448_v9 = vpack.c.bf16 %v426_v7, %v425_v6  ;;  %v409_v10 = vld [vmem:[%s2573_s10 + $0x10] sm:$0xff]  ;;  %v410_v11 = vld [vmem:[%s2573_s10 + $0x18] sm:$0xff]  ;;  %v427_v12 = vld [vmem:[%s2573_s10 + $0xa0] sm:$0xff]  ;;  %526 = vperm.xlu1 %2188, %v488_v42  }
  0x61   : > { %1872 = vmatprep.subr.bf16.mxu0 %v447_v4  ;;  %v428_v13 = vld [vmem:[%s2573_s10 + $0xa8] sm:$0xff]  ;;  %v440_v14 = vpack.c.bf16 %v410_v11, %v409_v10  ;;  %v411_v16 = vld [vmem:[%s2573_s10 + $0x20] sm:$0xff]  ;;  %v429_v18 = vld [vmem:[%s2573_s10 + $0xb0] sm:$0xff] }
  0x62   : > { %1873 = vmatpush3.bf16.msra.mxu0 %v439_v8  ;;  %v449_v15 = vpack.c.bf16 %v428_v13, %v427_v12  ;;  %v412_v17 = vld [vmem:[%s2573_s10 + $0x28] sm:$0xff]  ;;  %v430_v19 = vld [vmem:[%s2573_s10 + $0xb8] sm:$0xff]  ;;  %v413_v22 = vld [vmem:[%s2573_s10 + $0x30] sm:$0xff] }
  0x63   : > { %1874 = vmatprep.subr.bf16.mxu0 %v448_v9  ;;  %v441_v20 = vpack.c.bf16 %v412_v17, %v411_v16  ;;  %v450_v21 = vpack.c.bf16 %v430_v19, %v429_v18  ;;  %v414_v23 = vld [vmem:[%s2573_s10 + $0x38] sm:$0xff]  ;;  %v431_v24 = vld [vmem:[%s2573_s10 + $0xc0] sm:$0xff]  ;;  %v432_v25 = vld [vmem:[%s2573_s10 + $0xc8] sm:$0xff]  ;;  %611 = vperm.xlu0 %2187, %v505_v44  }
  0x64   : > { %v442_v27 = vpack.c.bf16 %v414_v23, %v413_v22  ;;  %v415_v28 = vld [vmem:[%s2573_s10 + $0x40] sm:$0xff]  ;;  %v451_v29 = vpack.c.bf16 %v432_v25, %v431_v24  ;;  %v416_v30 = vld [vmem:[%s2573_s10 + $0x48] sm:$0xff]  ;;  %v433_v31 = vld [vmem:[%s2573_s10 + $0xd0] sm:$0xff]  ;;  %616 = vperm.xlu1 %2188, %v506_v50  }
  0x65   : > { %v434_v32 = vld [vmem:[%s2573_s10 + $0xd8] sm:$0xff]  ;;  %v443_v34 = vpack.c.bf16 %v416_v30, %v415_v28  ;;  %v417_v35 = vld [vmem:[%s2573_s10 + $0x50] sm:$0xff]  ;;  %v435_v40 = vld [vmem:[%s2573_s10 + $0xe0] sm:$0xff] }
  0x66   : > { %1875 = vmatpush3.bf16.msra.mxu0 %v440_v14  ;;  %v452_v38 = vpack.c.bf16 %v434_v32, %v433_v31  ;;  %v418_v39 = vld [vmem:[%s2573_s10 + $0x58] sm:$0xff]  ;;  %v436_v41 = vld [vmem:[%s2573_s10 + $0xe8] sm:$0xff]  ;;  %v419_v46 = vld [vmem:[%s2573_s10 + $0x60] sm:$0xff] }
  0x67   : > { %1876 = vmatprep.subr.bf16.mxu0 %v449_v15  ;;  %v444_v43 = vpack.c.bf16 %v418_v39, %v417_v35  ;;  %v453_v45 = vpack.c.bf16 %v436_v41, %v435_v40  ;;  %v420_v47 = vld [vmem:[%s2573_s10 + $0x68] sm:$0xff]  ;;  %v437_v48 = vld [vmem:[%s2573_s10 + $0xf0] sm:$0xff]  ;;  %v438_v49 = vld [vmem:[%s2573_s10 + $0xf8] sm:$0xff]  ;;  %531 = vperm.xlu0 %2187, %v489_v52  }
  0x68   : > { %v445_v51 = vpack.c.bf16 %v420_v47, %v419_v46  ;;  %v454_v53 = vpack.c.bf16 %v438_v49, %v437_v48  ;;  %v421_v54 = vld [vmem:[%s2573_s10 + $0x70] sm:$0xff]  ;;  %v422_v55 = vld [vmem:[%s2573_s10 + $0x78] sm:$0xff]  ;;  %536 = vperm.xlu1 %2188, %v490_v56   ;;  %v2189_v60 = vld [vmem:[#allocation2] ss:$8 sps:$4 sm:$0xff]  }
  0x69   : > { %v446_v57 = vpack.c.bf16 %v422_v55, %v421_v54  ;;  %v492_v63 = vld [vmem:[%s2901_s2 + $0x28] sm:$0xff]  ;;  %v509_v0 = vld [vmem:[%s2901_s2 + $0xb0] sm:$0xff]  ;;  %v510_v1 = vld [vmem:[%s2901_s2 + $0xb8] sm:$0xff] }
  0x6a   : > { %1877 = vmatpush3.bf16.msra.mxu0 %v441_v20  ;;  %v2194_v2 = vld [vmem:[#allocation2 + $0x10] ss:$8 sps:$4 sm:$0xff]   ;;  %v2195_v3 = vld [vmem:[#allocation2 + $0x24] ss:$8 sps:$4 sm:$0xff]   ;;  %v2197_v8 = vld [vmem:[#allocation2 + $0x20] ss:$8 sps:$4 sm:$0xff]  }
  0x6b   : > { %1878 = vmatprep.subr.bf16.mxu0 %v450_v21  ;;  %621 = vperm.xlu0 %2187, %v507_v58   ;;  %v493_v4 = vld [vmem:[%s2901_s2 + $0x30] sm:$0xff]  ;;  %v494_v5 = vld [vmem:[%s2901_s2 + $0x38] sm:$0xff]  ;;  %v511_v6 = vld [vmem:[%s2901_s2 + $0xc0] sm:$0xff] }
  0x6c   : > { %626 = vperm.xlu1 %2188, %v508_v59   ;;  %v512_v7 = vld [vmem:[%s2901_s2 + $0xc8] sm:$0xff]  ;;  %v2198_v9 = vld [vmem:[#allocation2 + $0x34] ss:$8 sps:$4 sm:$0xff]   ;;  %v495_v10 = vld [vmem:[%s2901_s2 + $0x40] sm:$0xff] }
  0x6d   : > { %v496_v11 = vld [vmem:[%s2901_s2 + $0x48] sm:$0xff]  ;;  %v513_v12 = vld [vmem:[%s2901_s2 + $0xd0] sm:$0xff]  ;;  %v514_v14 = vld [vmem:[%s2901_s2 + $0xd8] sm:$0xff] }
  0x6e   : > { %1879 = vmatpush3.bf16.msra.mxu0 %v442_v27  ;;  %v2200_v13 = vld [vmem:[#allocation2 + $0x30] ss:$8 sps:$4 sm:$0xff]   ;;  %v2201_v15 = vld [vmem:[#allocation2 + $0x44] ss:$8 sps:$4 sm:$0xff]   ;;  %v2203_v20 = vld [vmem:[#allocation2 + $0x40] ss:$8 sps:$4 sm:$0xff]  }
  0x6f   : > { %1880 = vmatprep.subr.bf16.mxu0 %v451_v29  ;;  %541 = vperm.xlu0 %2187, %v491_v62   ;;  %v497_v16 = vld [vmem:[%s2901_s2 + $0x50] sm:$0xff]  ;;  %v498_v17 = vld [vmem:[%s2901_s2 + $0x58] sm:$0xff]  ;;  %v515_v18 = vld [vmem:[%s2901_s2 + $0xe0] sm:$0xff] }
  0x70   : > { %546 = vperm.xlu1 %2188, %v492_v63   ;;  %v516_v19 = vld [vmem:[%s2901_s2 + $0xe8] sm:$0xff]  ;;  %v2204_v21 = vld [vmem:[#allocation2 + $0x54] ss:$8 sps:$4 sm:$0xff]   ;;  %v499_v22 = vld [vmem:[%s2901_s2 + $0x60] sm:$0xff] }
  0x71   : > { %v500_v23 = vld [vmem:[%s2901_s2 + $0x68] sm:$0xff]  ;;  %v517_v24 = vld [vmem:[%s2901_s2 + $0xf0] sm:$0xff]  ;;  %v518_v25 = vld [vmem:[%s2901_s2 + $0xf8] sm:$0xff] }
  0x72   : > { %1881 = vmatpush3.bf16.msra.mxu0 %v443_v34  ;;  %v2206_v26 = vld [vmem:[#allocation2 + $0x50] ss:$8 sps:$4 sm:$0xff]   ;;  %v2207_v27 = vld [vmem:[#allocation2 + $0x64] ss:$8 sps:$4 sm:$0xff]   ;;  %v2209_v32 = vld [vmem:[#allocation2 + $0x60] ss:$8 sps:$4 sm:$0xff]  }
  0x73   : > { %1882 = vmatprep.subr.bf16.mxu0 %v452_v38  ;;  %631 = vperm.xlu0 %2187, %v509_v0   ;;  %v501_v28 = vld [vmem:[%s2901_s2 + $0x70] sm:$0xff]  ;;  %v502_v29 = vld [vmem:[%s2901_s2 + $0x78] sm:$0xff]  ;;  %v1064_v30 = vld [vmem:[%s2903_s4] sm:$0xff] }
  0x74   : > { %636 = vperm.xlu1 %2188, %v510_v1   ;;  %v1065_v31 = vld [vmem:[%s2903_s4 + $0x8] sm:$0xff]  ;;  %v2210_v33 = vld [vmem:[#allocation2 + $0x74] ss:$8 sps:$4 sm:$0xff]   ;;  %v1068_v36 = vld [vmem:[%s2903_s4 + $0x20] sm:$0xff] }
  0x75   : > { %v1066_v34 = vld [vmem:[%s2903_s4 + $0x10] sm:$0xff]  ;;  %v1067_v35 = vld [vmem:[%s2903_s4 + $0x18] sm:$0xff]  ;;  %v1069_v37 = vld [vmem:[%s2903_s4 + $0x28] sm:$0xff] }
  0x76   : > { %1883 = vmatpush3.bf16.msra.mxu0 %v444_v43  ;;  %v2212_v38 = vld [vmem:[#allocation2 + $0x70] ss:$8 sps:$4 sm:$0xff]   ;;  %v2213_v39 = vld [vmem:[#allocation2 + $0x84] ss:$8 sps:$4 sm:$0xff]   ;;  %v2215_v44 = vld [vmem:[#allocation2 + $0x80] ss:$8 sps:$4 sm:$0xff]  }
  0x77   : > { %1884 = vmatprep.subr.bf16.mxu0 %v453_v45  ;;  %551 = vperm.xlu0 %2187, %v493_v4   ;;  %v1070_v40 = vld [vmem:[%s2903_s4 + $0x30] sm:$0xff]  ;;  %v1071_v41 = vld [vmem:[%s2903_s4 + $0x38] sm:$0xff]  ;;  %v1072_v42 = vld [vmem:[%s2903_s4 + $0x40] sm:$0xff] }
  0x78   : > { %556 = vperm.xlu1 %2188, %v494_v5   ;;  %v1073_v43 = vld [vmem:[%s2903_s4 + $0x48] sm:$0xff]  ;;  %v2216_v45 = vld [vmem:[#allocation2 + $0x94] ss:$8 sps:$4 sm:$0xff]   ;;  %v1076_v48 = vld [vmem:[%s2903_s4 + $0x60] sm:$0xff] }
  0x79   : > { %v1074_v46 = vld [vmem:[%s2903_s4 + $0x50] sm:$0xff]  ;;  %v1075_v47 = vld [vmem:[%s2903_s4 + $0x58] sm:$0xff]  ;;  %v1077_v49 = vld [vmem:[%s2903_s4 + $0x68] sm:$0xff] }
  0x7a   : > { %1885 = vmatpush3.bf16.msra.mxu0 %v445_v51  ;;  %v2218_v50 = vld [vmem:[#allocation2 + $0x90] ss:$8 sps:$4 sm:$0xff]   ;;  %v2219_v51 = vld [vmem:[#allocation2 + $0xa4] ss:$8 sps:$4 sm:$0xff]   ;;  %v2221_v56 = vld [vmem:[#allocation2 + $0xa0] ss:$8 sps:$4 sm:$0xff]  }
  0x7b   : > { %1886 = vmatprep.subr.bf16.mxu0 %v454_v53  ;;  %641 = vperm.xlu0 %2187, %v511_v6   ;;  %v1078_v52 = vld [vmem:[%s2903_s4 + $0x70] sm:$0xff]  ;;  %v1079_v53 = vld [vmem:[%s2903_s4 + $0x78] sm:$0xff]  ;;  %v1377_v54 = vld [vmem:[%s2905_s6] sm:$0xff] }
  0x7c   : > { %646 = vperm.xlu1 %2188, %v512_v7   ;;  %v1378_v55 = vld [vmem:[%s2905_s6 + $0x8] sm:$0xff]  ;;  %v1379_v58 = vld [vmem:[%s2905_s6 + $0x10] sm:$0xff]  ;;  %v1380_v59 = vld [vmem:[%s2905_s6 + $0x18] sm:$0xff] }
  0x7d   : > { %v2224_v62 = vld [vmem:[#allocation2 + $0xb0] ss:$8 sps:$4 sm:$0xff]   ;;  %v2225_v63 = vld [vmem:[#allocation2 + $0xc4] ss:$8 sps:$4 sm:$0xff]   ;;  %v2227_v4 = vld [vmem:[#allocation2 + $0xc0] ss:$8 sps:$4 sm:$0xff]  }
  0x7e   : > { %1887 = vmatpush3.bf16.msra.mxu0 %v446_v57  ;;  %v2222_v57 = vld [vmem:[#allocation2 + $0xb4] ss:$8 sps:$4 sm:$0xff]  }
  0x7f   : > { %561 = vperm.xlu0 %2187, %v495_v10   ;;  %v1383_v0 = vld [vmem:[%s2905_s6 + $0x30] sm:$0xff]  ;;  %v1384_v1 = vld [vmem:[%s2905_s6 + $0x38] sm:$0xff] }
  0x80   : > { %566 = vperm.xlu1 %2188, %v496_v11   ;;  %v2228_v5 = vld [vmem:[#allocation2 + $0xd4] ss:$8 sps:$4 sm:$0xff]   ;;  %v2230_v10 = vld [vmem:[#allocation2 + $0xd0] ss:$8 sps:$4 sm:$0xff]   ;;  %v2231_v11 = vld [vmem:[#allocation2 + $0xe4] ss:$8 sps:$4 sm:$0xff]  }
  0x81   : > { %872 = vmatmul.mubr.bf16.vlgmr.msra.gmra.mrb[0].mxu0 %v2189_v60  ;;  %v1381_v60 = vld [vmem:[%s2905_s6 + $0x20] sm:$0xff]  ;;  %v1387_v6 = vld [vmem:[%s2905_s6 + $0x50] sm:$0xff]  ;;  %v1388_v7 = vld [vmem:[%s2905_s6 + $0x58] sm:$0xff] }
  0x82   : > { %879 = vmatprep.mubr.bf16.mxu0 %v2192_v61  ;;  %v1382_v61 = vld [vmem:[%s2905_s6 + $0x28] sm:$0xff] }
  0x83   : > { %651 = vperm.xlu0 %2187, %v513_v12   ;;  %v1391_v12 = vld [vmem:[%s2905_s6 + $0x70] sm:$0xff] }
  0x84   : > { %656 = vperm.xlu1 %2188, %v514_v14   ;;  %v1643_v14 = vld [vmem:[%s2907_s8] sm:$0x7] }
  0x87   : > { %571 = vperm.xlu0 %2187, %v497_v16   ;;  %v2234_v16 = vld [vmem:[#allocation2 + $0xf4] ss:$8 sps:$4 sm:$0xff]  }
  0x88   : > { %576 = vperm.xlu1 %2188, %v498_v17   ;;  %v2236_v17 = vld [vmem:[#allocation2 + $0xf0] ss:$8 sps:$4 sm:$0xff]  }
  0x89   : > { %880 = vmatmul.mubr.bf16.gmra.mrb[4].mxu0 %v2194_v2  ;;  %v1385_v2 = vld [vmem:[%s2905_s6 + $0x40] sm:$0xff] }
  0x8a   : > { %887 = vmatprep.mubr.bf16.mxu0 %v2195_v3  ;;  %v1386_v3 = vld [vmem:[%s2905_s6 + $0x48] sm:$0xff] }
  0x8b   : > { %661 = vperm.xlu0 %2187, %v515_v18  }
  0x8c   : > { %666 = vperm.xlu1 %2188, %v516_v19  }
  0x8f   : > { %581 = vperm.xlu0 %2187, %v499_v22  }
  0x90   : > { %586 = vperm.xlu1 %2188, %v500_v23  }
  0x91   : > { %888 = vmatmul.mubr.bf16.gmra.mrb[8].mxu0 %v2197_v8  ;;  %v1389_v8 = vld [vmem:[%s2905_s6 + $0x60] sm:$0xff] }
  0x92   : > { %895 = vmatprep.mubr.bf16.mxu0 %v2198_v9  ;;  %v1390_v9 = vld [vmem:[%s2905_s6 + $0x68] sm:$0xff] }
  0x93   : > { %671 = vperm.xlu0 %2187, %v517_v24  }
  0x94   : > { %676 = vperm.xlu1 %2188, %v518_v25  }
  0x97   : > { %591 = vperm.xlu0 %2187, %v501_v28  }
  0x98   : > { %596 = vperm.xlu1 %2188, %v502_v29  }
  0x99   : > { %896 = vmatmul.mubr.bf16.gmra.mrb[12].mxu0 %v2200_v13  ;;  %v1392_v13 = vld [vmem:[%s2905_s6 + $0x78] sm:$0xff] }
  0x9a   : > { %903 = vmatprep.mubr.bf16.mxu0 %v2201_v15  ;;  %v2233_v15 = vld [vmem:[#allocation2 + $0xe0] ss:$8 sps:$4 sm:$0xff]  }
  0x9b   : > { %1082 = vperm.xlu0 %2187, %v1064_v30  }
  0x9c   : > { %1087 = vperm.xlu1 %2188, %v1065_v31  }
  0x9f   : > { %1092 = vperm.xlu0 %2187, %v1066_v34  }
  0xa0   : > { %1097 = vperm.xlu1 %2188, %v1067_v35  }
  0xa1   : > { %904 = vmatmul.mubr.bf16.gmra.mrb[16].mxu0 %v2203_v20 }
  0xa2   : > { %911 = vmatprep.mubr.bf16.mxu0 %v2204_v21 }
  0xa3   : > { %1102 = vperm.xlu0 %2187, %v1068_v36  }
  0xa4   : > { %1107 = vperm.xlu1 %2188, %v1069_v37  }
  0xa7   : > { %1112 = vperm.xlu0 %2187, %v1070_v40  }
  0xa8   : > { %1117 = vperm.xlu1 %2188, %v1071_v41  }
  0xa9   : > { %912 = vmatmul.mubr.bf16.gmra.mrb[20].mxu0 %v2206_v26 }
  0xaa   : > { %919 = vmatprep.mubr.bf16.mxu0 %v2207_v27 }
  0xab   : > { %1122 = vperm.xlu0 %2187, %v1072_v42  }
  0xac   : > { %1127 = vperm.xlu1 %2188, %v1073_v43  }
  0xaf   : > { %1132 = vperm.xlu0 %2187, %v1074_v46  }
  0xb0   : > { %1137 = vperm.xlu1 %2188, %v1075_v47  }
  0xb1   : > { %920 = vmatmul.mubr.bf16.gmra.mrb[24].mxu0 %v2209_v32 }
  0xb2   : > { %927 = vmatprep.mubr.bf16.mxu0 %v2210_v33 }
  0xb3   : > { %1142 = vperm.xlu0 %2187, %v1076_v48  }
  0xb4   : > { %1147 = vperm.xlu1 %2188, %v1077_v49  }
  0xb7   : > { %1152 = vperm.xlu0 %2187, %v1078_v52  }
  0xb8   : > { %1157 = vperm.xlu1 %2188, %v1079_v53  }
  0xb9   : > { %928 = vmatmul.mubr.bf16.gmra.mrb[28].mxu0 %v2212_v38  ;;  %v2239_v38 = vld [vmem:[#allocation4 + $0x4] ss:$8 sps:$4 sm:$0xff]  }
  0xba   : > { %935 = vmatprep.mubr.bf16.mxu0 %v2213_v39  ;;  %1272 = vmatprep.mubr.bf16.mxu1 %v2239_v38 }
  0xbb   : > { %1395 = vperm.xlu0 %2187, %v1377_v54  }
  0xbc   : > { %1400 = vperm.xlu1 %2188, %v1378_v55  }
  0xbf   : > { %1405 = vperm.xlu0 %2187, %v1379_v58  }
  0xc0   : > { %1410 = vperm.xlu1 %2188, %v1380_v59  }
  0xc1   : > { %936 = vmatmul.mubr.bf16.gmra.mrb[32].mxu0 %v2215_v44 }
  0xc2   : > { %943 = vmatprep.mubr.bf16.mxu0 %v2216_v45 }
  0xc3   : > { %1415 = vperm.xlu0 %2187, %v1381_v60  }
  0xc4   : > { %1420 = vperm.xlu1 %2188, %v1382_v61  }
  0xc7   : > { %1425 = vperm.xlu0 %2187, %v1383_v0  }
  0xc8   : > { %1430 = vperm.xlu1 %2188, %v1384_v1  }
  0xc9   : > { %944 = vmatmul.mubr.bf16.gmra.mrb[36].mxu0 %v2218_v50 }
  0xca   : > { %951 = vmatprep.mubr.bf16.mxu0 %v2219_v51 }
  0xcb   : > { %1435 = vperm.xlu0 %2187, %v1385_v2  }
  0xcc   : > { %1440 = vperm.xlu1 %2188, %v1386_v3  }
  0xcf   : > { %1445 = vperm.xlu0 %2187, %v1387_v6  }
  0xd0   : > { %1450 = vperm.xlu1 %2188, %v1388_v7  }
  0xd1   : > { %952 = vmatmul.mubr.bf16.gmra.mrb[40].mxu0 %v2221_v56 }
  0xd2   : > { %959 = vmatprep.mubr.bf16.mxu0 %v2222_v57 }
  0xd3   : > { %1455 = vperm.xlu0 %2187, %v1389_v8  }
  0xd4   : > { %1460 = vperm.xlu1 %2188, %v1390_v9  }
  0xd7   : > { %1465 = vperm.xlu0 %2187, %v1391_v12  }
  0xd8   : > { %1470 = vperm.xlu1 %2188, %v1392_v13  }
  0xd9   : > { %960 = vmatmul.mubr.bf16.gmra.mrb[44].mxu0 %v2224_v62 }
  0xda   : > { %967 = vmatprep.mubr.bf16.mxu0 %v2225_v63  ;;  %v2802_v18 = vpop.permute.xlu0 %601 }
  0xdb   : > { %1646 = vperm.xlu0 %2187, %v1643_v14   ;;  %v522_v19 = vpop.permute.xlu1 %521 }
  0xde   : > { %v2804_v20 = vpop.permute.xlu0 %606 }
  0xdf   : > { %v527_v21 = vpop.permute.xlu1 %526 }
  0xe1   : > { %968 = vmatmul.mubr.bf16.gmra.mrb[48].mxu0 %v2227_v4 }
  0xe2   : > { %975 = vmatprep.mubr.bf16.mxu0 %v2228_v5  ;;  %v2806_v22 = vpop.permute.xlu0 %611 }
  0xe3   : > { %v2808_v23 = vpop.permute.xlu1 %616 }
  0xe6   : > { %v532_v24 = vpop.permute.xlu0 %531 }
  0xe7   : > { %v537_v25 = vpop.permute.xlu1 %536 }
  0xe9   : > { %976 = vmatmul.mubr.bf16.gmra.mrb[52].mxu0 %v2230_v10 }
  0xea   : > { %983 = vmatprep.mubr.bf16.mxu0 %v2231_v11  ;;  %v2810_v26 = vpop.permute.xlu0 %621 }
  0xeb   : > { %v2812_v27 = vpop.permute.xlu1 %626 }
  0xee   : > { %v542_v28 = vpop.permute.xlu0 %541 }
  0xef   : > { %v547_v30 = vpop.permute.xlu1 %546 }
  0xf1   : > { %984 = vmatmul.mubr.bf16.gmra.mrb[56].mxu0 %v2233_v15 }
  0xf2   : > { %991 = vmatprep.mubr.bf16.mxu0 %v2234_v16  ;;  %v2814_v37 = vpop.permute.xlu0 %631 }
  0xf3   : > { %v2816_v40 = vpop.permute.xlu1 %636 }
  0xf6   : > { %v552_v48 = vpop.permute.xlu0 %551 }
  0xf7   : > { %v557_v52 = vpop.permute.xlu1 %556 }
  0xf9   : > { %992 = vmatmul.mubr.bf16.gmra.mrb[60].mxu0 %v2236_v17 }
  0xfa   : > { %v2820_v57 = vpop.permute.xlu0 %641 }
  0xfb   : > { %v2824_v62 = vpop.permute.xlu1 %646 }
  0xfe   : > { %v562_v3 = vpop.permute.xlu0 %561 }
  0xff   : > { %v567_v7 = vpop.permute.xlu1 %566 }
 0x102   : > { %v2828_v15 = vpop.permute.xlu0 %651 }
 0x103   : > { %v2830_v17 = vpop.permute.xlu1 %656 }
 0x154   : > { %v1888_v29 = vpop.f32.mrb[0].mxu0 }
 0x155   : > { %v1889_v31 = vpop.f32.mrb[1].mxu0 }
 0x156   : > { %v1890_v32 = vadd.f32 %v1889_v31, %v1888_v29  ;;  %v1891_v33 = vpop.f32.mrb[2].mxu0  ;;  %v572_v31 = vpop.permute.xlu0 %571 }
 0x157   : > { %v1892_v34 = vpop.f32.mrb[3].mxu0 }
 0x158   : > { %v874_v35 = vadd.f32 %v1890_v32, %v522_v19  ;;  %v1893_v36 = vadd.f32 %v1892_v34, %v1891_v33 }
 0x15a   : > { %v877_v39 = vadd.f32 %v1893_v36, %v527_v21  ;;  %v1000_v41 = vmax.f32 %v874_v35, 0.0  ;;  %v577_v35 = vpop.permute.xlu1 %576 }
 0x15c   : > { %v1001_v42 = vmax.f32 %v877_v39, 0.0  ;;  %v1894_v43 = vpop.f32.mrb[4].mxu0 }
 0x15d   : > { %v1895_v44 = vpop.f32.mrb[5].mxu0 }
 0x15e   : > { %v1896_v45 = vadd.f32 %v1895_v44, %v1894_v43  ;;  %v1897_v46 = vpop.f32.mrb[6].mxu0  ;;  %v2818_v47 = vpack.c.bf16 %v1001_v42, %v1000_v41  ;;  %v2834_v42 = vpop.permute.xlu0 %661 }
 0x15f   : > { %v1898_v49 = vpop.f32.mrb[7].mxu0 }
 0x160   : > { %v882_v50 = vadd.f32 %v1896_v45, %v532_v24  ;;  %v1899_v51 = vadd.f32 %v1898_v49, %v1897_v46 }
 0x162   : > { %v885_v53 = vadd.f32 %v1899_v51, %v537_v25  ;;  %v1002_v54 = vmax.f32 %v882_v50, 0.0 }
 0x164   : > { %v1003_v55 = vmax.f32 %v885_v53, 0.0  ;;  %v1900_v56 = vpop.f32.mrb[8].mxu0  ;;  %v582_v53 = vpop.permute.xlu0 %581 }
 0x165   : > { %v1901_v58 = vpop.f32.mrb[9].mxu0 }
 0x166   : > { %v1902_v59 = vadd.f32 %v1901_v58, %v1900_v56  ;;  %v1903_v60 = vpop.f32.mrb[10].mxu0  ;;  %v2822_v61 = vpack.c.bf16 %v1003_v55, %v1002_v54 }
 0x167   : > { %v1904_v63 = vpop.f32.mrb[11].mxu0 }
 0x168   : > { %v890_v0 = vadd.f32 %v1902_v59, %v542_v28  ;;  %v1905_v1 = vadd.f32 %v1904_v63, %v1903_v60 }
 0x16a   : > { %v893_v2 = vadd.f32 %v1905_v1, %v547_v30  ;;  %v1004_v4 = vmax.f32 %v890_v0, 0.0 }
 0x16c   : > { %v1005_v5 = vmax.f32 %v893_v2, 0.0  ;;  %v1906_v6 = vpop.f32.mrb[12].mxu0 }
 0x16d   : > { %v1907_v8 = vpop.f32.mrb[13].mxu0 }
 0x16e   : > { %v1908_v9 = vadd.f32 %v1907_v8, %v1906_v6  ;;  %v1909_v10 = vpop.f32.mrb[14].mxu0  ;;  %v2826_v11 = vpack.c.bf16 %v1005_v5, %v1004_v4  ;;  %v2842_v4 = vpop.permute.xlu0 %671 }
 0x16f   : > { %v1910_v12 = vpop.f32.mrb[15].mxu0 }
 0x170   : > { %v898_v13 = vadd.f32 %v1908_v9, %v552_v48  ;;  %v1911_v14 = vadd.f32 %v1910_v12, %v1909_v10  ;;  %v2838_v48 = vpop.permute.xlu1 %666 }
 0x172   : > { %v901_v16 = vadd.f32 %v1911_v14, %v557_v52  ;;  %v1006_v19 = vmax.f32 %v898_v13, 0.0 }
 0x174   : > { %v1007_v21 = vmax.f32 %v901_v16, 0.0  ;;  %v1912_v24 = vpop.f32.mrb[16].mxu0  ;;  %v587_v58 = vpop.permute.xlu1 %586 }
 0x175   : > { %v1913_v25 = vpop.f32.mrb[17].mxu0  ;;  %v592_v16 = vpop.permute.xlu0 %591 }
 0x176   : > { %v1914_v28 = vadd.f32 %v1913_v25, %v1912_v24  ;;  %v1915_v29 = vpop.f32.mrb[18].mxu0  ;;  %v2832_v30 = vpack.c.bf16 %v1007_v21, %v1006_v19 }
 0x177   : > { %v1916_v32 = vpop.f32.mrb[19].mxu0 }
 0x178   : > { %v906_v33 = vadd.f32 %v1914_v28, %v562_v3  ;;  %v1917_v34 = vadd.f32 %v1916_v32, %v1915_v29  ;;  %v2844_v6 = vpop.permute.xlu1 %676 }
 0x17a   : > { %v909_v36 = vadd.f32 %v1917_v34, %v567_v7  ;;  %v1008_v38 = vmax.f32 %v906_v33, 0.0 }
 0x17c   : > { %v1009_v39 = vmax.f32 %v909_v36, 0.0  ;;  %v1918_v41 = vpop.f32.mrb[20].mxu0  ;;  %v597_v25 = vpop.permute.xlu1 %596 }
 0x17d   : > { %v1919_v43 = vpop.f32.mrb[21].mxu0 }
 0x17e   : > { %v1920_v44 = vadd.f32 %v1919_v43, %v1918_v41  ;;  %v1921_v45 = vpop.f32.mrb[22].mxu0  ;;  %v2836_v46 = vpack.c.bf16 %v1009_v39, %v1008_v38 }
 0x17f   : > { %v1922_v49 = vpop.f32.mrb[23].mxu0 }
 0x180   : > { %v914_v50 = vadd.f32 %v1920_v44, %v572_v31  ;;  %v1923_v51 = vadd.f32 %v1922_v49, %v1921_v45 }
 0x182   : > { %v917_v52 = vadd.f32 %v1923_v51, %v577_v35  ;;  %v1010_v54 = vmax.f32 %v914_v50, 0.0 }
 0x184   : > { %v1011_v55 = vmax.f32 %v917_v52, 0.0  ;;  %v1924_v56 = vpop.f32.mrb[24].mxu0 }
 0x185   : > { %v1925_v59 = vpop.f32.mrb[25].mxu0 }
 0x186   : > { %v1926_v60 = vadd.f32 %v1925_v59, %v1924_v56  ;;  %v1927_v63 = vpop.f32.mrb[26].mxu0  ;;  %v2840_v0 = vpack.c.bf16 %v1011_v55, %v1010_v54 }
 0x187   : > { %v1928_v1 = vpop.f32.mrb[27].mxu0 }
 0x188   : > { %v922_v2 = vadd.f32 %v1926_v60, %v582_v53  ;;  %v1929_v3 = vadd.f32 %v1928_v1, %v1927_v63 }
 0x18a   : > { %v925_v5 = vadd.f32 %v1929_v3, %v587_v58  ;;  %v1012_v7 = vmax.f32 %v922_v2, 0.0 }
 0x18c   : > { %v1013_v8 = vmax.f32 %v925_v5, 0.0  ;;  %v1930_v9 = vpop.f32.mrb[28].mxu0 }
 0x18d   : > { %v1931_v10 = vpop.f32.mrb[29].mxu0 }
 0x18e   : > { %v1932_v12 = vadd.f32 %v1931_v10, %v1930_v9  ;;  %v1933_v13 = vpop.f32.mrb[30].mxu0  ;;  %v2846_v14 = vpack.c.bf16 %v1013_v8, %v1012_v7 }
 0x18f   : > { %v1934_v19 = vpop.f32.mrb[31].mxu0 }
 0x190   : > { %v930_v21 = vadd.f32 %v1932_v12, %v592_v16  ;;  %v1935_v24 = vadd.f32 %v1934_v19, %v1933_v13 }
 0x192   : > { %v933_v28 = vadd.f32 %v1935_v24, %v597_v25  ;;  %v1014_v29 = vmax.f32 %v930_v21, 0.0 }
 0x194   : > { %v1015_v31 = vmax.f32 %v933_v28, 0.0  ;;  %v1936_v32 = vpop.f32.mrb[32].mxu0 }
 0x195   : > { %v1937_v33 = vpop.f32.mrb[33].mxu0 }
 0x196   : > { %v1938_v34 = vadd.f32 %v1937_v33, %v1936_v32  ;;  %v1939_v35 = vpop.f32.mrb[34].mxu0  ;;  %v2848_v36 = vpack.c.bf16 %v1015_v31, %v1014_v29 }
 0x197   : > { %v1940_v38 = vpop.f32.mrb[35].mxu0 }
 0x198   : > { %v1941_v39 = vadd.f32 %v1940_v38, %v1939_v35  ;;  %v938_v41 = vadd.f32 %v1938_v34, %v2802_v18 }
 0x19a   : > { %v941_v43 = vadd.f32 %v1941_v39, %v2804_v20  ;;  %v1016_v45 = vmax.f32 %v938_v41, 0.0 }
 0x19c   : > { %v1942_v44 = vpop.f32.mrb[36].mxu0  ;;  %v1017_v49 = vmax.f32 %v941_v43, 0.0 }
 0x19d   : > { %v1943_v50 = vpop.f32.mrb[37].mxu0 }
 0x19e   : > { %v1944_v51 = vadd.f32 %v1943_v50, %v1942_v44  ;;  %v1945_v52 = vpop.f32.mrb[38].mxu0  ;;  %v1040_v53 = vpack.c.bf16 %v1017_v49, %v1016_v45 }
 0x19f   : > { %v1946_v54 = vpop.f32.mrb[39].mxu0 }
 0x1a0   : > { %v946_v55 = vadd.f32 %v1944_v51, %v2806_v22  ;;  %v1947_v56 = vadd.f32 %v1946_v54, %v1945_v52  ;;  %1984 = vmatprep.subr.bf16.mxu1 %v1040_v53 }
 0x1a1   : > { %1985 = vmatpush3.bf16.msra.mxu1 %v2818_v47 }
 0x1a2   : > { %v949_v58 = vadd.f32 %v1947_v56, %v2808_v23  ;;  %v1018_v59 = vmax.f32 %v946_v55, 0.0 }
 0x1a4   : > { %v1019_v18 = vmax.f32 %v949_v58, 0.0  ;;  %v1948_v60 = vpop.f32.mrb[40].mxu0 }
 0x1a5   : > { %v1949_v20 = vpop.f32.mrb[41].mxu0 }
 0x1a6   : > { %v1950_v63 = vadd.f32 %v1949_v20, %v1948_v60  ;;  %v1951_v1 = vpop.f32.mrb[42].mxu0  ;;  %v1041_v2 = vpack.c.bf16 %v1019_v18, %v1018_v59 }
 0x1a7   : > { %v1952_v3 = vpop.f32.mrb[43].mxu0 }
 0x1a8   : > { %v954_v5 = vadd.f32 %v1950_v63, %v2810_v26  ;;  %v1953_v7 = vadd.f32 %v1952_v3, %v1951_v1  ;;  %1986 = vmatprep.subr.bf16.mxu1 %v1041_v2 }
 0x1a9   : > { %1987 = vmatpush3.bf16.msra.mxu1 %v2822_v61 }
 0x1aa   : > { %v957_v22 = vadd.f32 %v1953_v7, %v2812_v27  ;;  %v1020_v8 = vmax.f32 %v954_v5, 0.0 }
 0x1ac   : > { %v1021_v47 = vmax.f32 %v957_v22, 0.0  ;;  %v1954_v9 = vpop.f32.mrb[44].mxu0  ;;  %v2240_v22 = vld [vmem:[#allocation4 + $0x14] ss:$8 sps:$4 sm:$0xff]  }
 0x1ad   : > { %v1955_v23 = vpop.f32.mrb[45].mxu0 }
 0x1ae   : > { %v1956_v10 = vadd.f32 %v1955_v23, %v1954_v9  ;;  %v1957_v12 = vpop.f32.mrb[46].mxu0  ;;  %v1042_v13 = vpack.c.bf16 %v1021_v47, %v1020_v8  ;;  %v2242_v8 = vld [vmem:[#allocation4 + $0x10] ss:$8 sps:$4 sm:$0xff]   ;;  %v2243_v47 = vld [vmem:[#allocation4 + $0x24] ss:$8 sps:$4 sm:$0xff]  }
 0x1af   : > { %v1958_v16 = vpop.f32.mrb[47].mxu0  ;;  %v2246_v9 = vld [vmem:[#allocation4 + $0x34] ss:$8 sps:$4 sm:$0xff]   ;;  %v2251_v23 = vld [vmem:[#allocation4 + $0x40] ss:$8 sps:$4 sm:$0xff]  }
 0x1b0   : > { %v962_v19 = vadd.f32 %v1956_v10, %v2814_v37  ;;  %v1959_v21 = vadd.f32 %v1958_v16, %v1957_v12  ;;  %1988 = vmatprep.subr.bf16.mxu1 %v1042_v13  ;;  %v2252_v10 = vld [vmem:[#allocation4 + $0x54] ss:$8 sps:$4 sm:$0xff]   ;;  %v2255_v12 = vld [vmem:[#allocation4 + $0x64] ss:$8 sps:$4 sm:$0xff]   ;;  %v2257_v13 = vld [vmem:[#allocation4 + $0x60] ss:$8 sps:$4 sm:$0xff]  }
 0x1b1   : > { %1989 = vmatpush3.bf16.msra.mxu1 %v2826_v11  ;;  %v2258_v16 = vld [vmem:[#allocation4 + $0x74] ss:$8 sps:$4 sm:$0xff]  }
 0x1b2   : > { %v965_v26 = vadd.f32 %v1959_v21, %v2816_v40  ;;  %v1022_v24 = vmax.f32 %v962_v19, 0.0  ;;  %v2260_v19 = vld [vmem:[#allocation4 + $0x70] ss:$8 sps:$4 sm:$0xff]   ;;  %v2261_v21 = vld [vmem:[#allocation6] sm:$0xff]  }
 0x1b4   : > { %v1023_v61 = vmax.f32 %v965_v26, 0.0  ;;  %v1960_v25 = vpop.f32.mrb[48].mxu0 }
 0x1b5   : > { %v1961_v27 = vpop.f32.mrb[49].mxu0 }
 0x1b6   : > { %v1962_v28 = vadd.f32 %v1961_v27, %v1960_v25  ;;  %v1963_v29 = vpop.f32.mrb[50].mxu0  ;;  %v1043_v31 = vpack.c.bf16 %v1023_v61, %v1022_v24  ;;  %v1083_v27 = vpop.permute.xlu0 %1082 }
 0x1b7   : > { %v1964_v32 = vpop.f32.mrb[51].mxu0 }
 0x1b8   : > { %v970_v33 = vadd.f32 %v1962_v28, %v2820_v57  ;;  %v1965_v34 = vadd.f32 %v1964_v32, %v1963_v29  ;;  %1990 = vmatprep.subr.bf16.mxu1 %v1043_v31  ;;  %v1088_v32 = vpop.permute.xlu1 %1087 }
 0x1b9   : > { %1991 = vmatpush3.bf16.msra.mxu1 %v2832_v30 }
 0x1ba   : > { %v973_v37 = vadd.f32 %v1965_v34, %v2824_v62  ;;  %v1024_v35 = vmax.f32 %v970_v33, 0.0 }
 0x1bc   : > { %v1025_v11 = vmax.f32 %v973_v37, 0.0  ;;  %v1966_v38 = vpop.f32.mrb[52].mxu0 }
 0x1bd   : > { %v1967_v40 = vpop.f32.mrb[53].mxu0 }
 0x1be   : > { %v1968_v39 = vadd.f32 %v1967_v40, %v1966_v38  ;;  %v1969_v41 = vpop.f32.mrb[54].mxu0  ;;  %v1044_v43 = vpack.c.bf16 %v1025_v11, %v1024_v35 }
 0x1bf   : > { %v1970_v44 = vpop.f32.mrb[55].mxu0 }
 0x1c0   : > { %v978_v45 = vadd.f32 %v1968_v39, %v2828_v15  ;;  %v1971_v49 = vadd.f32 %v1970_v44, %v1969_v41  ;;  %1992 = vmatprep.subr.bf16.mxu1 %v1044_v43  ;;  %v1093_v41 = vpop.permute.xlu0 %1092 }
 0x1c1   : > { %1993 = vmatpush3.bf16.msra.mxu1 %v2836_v46 }
 0x1c2   : > { %v981_v57 = vadd.f32 %v1971_v49, %v2830_v17  ;;  %v1026_v50 = vmax.f32 %v978_v45, 0.0  ;;  %v1098_v49 = vpop.permute.xlu1 %1097 }
 0x1c4   : > { %v1027_v30 = vmax.f32 %v981_v57, 0.0  ;;  %v1972_v51 = vpop.f32.mrb[56].mxu0 }
 0x1c5   : > { %v1973_v62 = vpop.f32.mrb[57].mxu0 }
 0x1c6   : > { %v1974_v52 = vadd.f32 %v1973_v62, %v1972_v51  ;;  %v1975_v53 = vpop.f32.mrb[58].mxu0  ;;  %v1045_v54 = vpack.c.bf16 %v1027_v30, %v1026_v50 }
 0x1c7   : > { %v1976_v55 = vpop.f32.mrb[59].mxu0 }
 0x1c8   : > { %v986_v56 = vadd.f32 %v1974_v52, %v2834_v42  ;;  %v1977_v58 = vadd.f32 %v1976_v55, %v1975_v53  ;;  %1994 = vmatprep.subr.bf16.mxu1 %v1045_v54  ;;  %v1103_v55 = vpop.permute.xlu0 %1102 }
 0x1c9   : > { %1995 = vmatpush3.bf16.msra.mxu1 %v2840_v0 }
 0x1ca   : > { %v989_v15 = vadd.f32 %v1977_v58, %v2838_v48  ;;  %v1028_v59 = vmax.f32 %v986_v56, 0.0  ;;  %v2237_v48 = vld [vmem:[#allocation4] ss:$8 sps:$4 sm:$0xff]  }
 0x1cc   : > { %v1029_v46 = vmax.f32 %v989_v15, 0.0  ;;  %v1978_v18 = vpop.f32.mrb[60].mxu0 }
 0x1cd   : > { %v1979_v17 = vpop.f32.mrb[61].mxu0 }
 0x1ce   : > { %v1980_v60 = vadd.f32 %v1979_v17, %v1978_v18  ;;  %v1981_v20 = vpop.f32.mrb[62].mxu0  ;;  %v1046_v63 = vpack.c.bf16 %v1029_v46, %v1028_v59  ;;  %v1108_v59 = vpop.permute.xlu1 %1107 }
 0x1cf   : > { %v1982_v1 = vpop.f32.mrb[63].mxu0 }
 0x1d0   : > { %v994_v2 = vadd.f32 %v1980_v60, %v2842_v4  ;;  %v1983_v3 = vadd.f32 %v1982_v1, %v1981_v20  ;;  %1996 = vmatprep.subr.bf16.mxu1 %v1046_v63  ;;  %v2245_v4 = vld [vmem:[#allocation4 + $0x20] ss:$8 sps:$4 sm:$0xff]  }
 0x1d1   : > { %1997 = vmatpush3.bf16.msra.mxu1 %v2846_v14  ;;  %v2248_v14 = vld [vmem:[#allocation4 + $0x30] ss:$8 sps:$4 sm:$0xff]  }
 0x1d2   : > { %v997_v42 = vadd.f32 %v1983_v3, %v2844_v6  ;;  %v1030_v5 = vmax.f32 %v994_v2, 0.0  ;;  %v2249_v6 = vld [vmem:[#allocation4 + $0x44] ss:$8 sps:$4 sm:$0xff]   ;;  %v1113_v3 = vpop.permute.xlu0 %1112 }
 0x1d4   : > { %v1031_v0 = vmax.f32 %v997_v42, 0.0 }
 0x1d6   : > { %v1047_v7 = vpack.c.bf16 %v1031_v0, %v1030_v5 }
 0x1d8   : > { %1998 = vmatprep.subr.bf16.mxu1 %v1047_v7  ;;  %v1118_v7 = vpop.permute.xlu1 %1117 }
 0x1d9   : > { %1999 = vmatpush3.bf16.msra.mxu1 %v2848_v36  ;;  %v2254_v36 = vld [vmem:[#allocation4 + $0x50] ss:$8 sps:$4 sm:$0xff]  }
 0x1dc   : > { %1273 = vmatmul.mubr.bf16.vlgmr.msra.gmra.mrb[0].mxu1 %v2237_v48 }
 0x1dd   : > { %1280 = vmatprep.mubr.bf16.mxu1 %v2240_v22 }
 0x1e4   : > { %1281 = vmatmul.mubr.bf16.gmra.mrb[4].mxu1 %v2242_v8 }
 0x1e5   : > { %1288 = vmatprep.mubr.bf16.mxu1 %v2243_v47 }
 0x1ec   : > { %1289 = vmatmul.mubr.bf16.gmra.mrb[8].mxu1 %v2245_v4 }
 0x1ed   : > { %1296 = vmatprep.mubr.bf16.mxu1 %v2246_v9 }
 0x1f4   : > { %1297 = vmatmul.mubr.bf16.gmra.mrb[12].mxu1 %v2248_v14 }
 0x1f5   : > { %1304 = vmatprep.mubr.bf16.mxu1 %v2249_v6 }
 0x1fc   : > { %1305 = vmatmul.mubr.bf16.gmra.mrb[16].mxu1 %v2251_v23  ;;  %v1123_v23 = vpop.permute.xlu0 %1122 }
 0x1fd   : > { %1312 = vmatprep.mubr.bf16.mxu1 %v2252_v10 }
 0x204   : > { %1313 = vmatmul.mubr.bf16.gmra.mrb[20].mxu1 %v2254_v36 }
 0x205   : > { %1320 = vmatprep.mubr.bf16.mxu1 %v2255_v12 }
 0x20c   : > { %1321 = vmatmul.mubr.bf16.gmra.mrb[24].mxu1 %v2257_v13  ;;  %v1128_v13 = vpop.permute.xlu1 %1127 }
 0x20d   : > { %1328 = vmatprep.mubr.bf16.mxu1 %v2258_v16 }
 0x214   : > { %1329 = vmatmul.mubr.bf16.gmra.mrb[28].mxu1 %v2260_v19 }
 0x215   : > { %2089 = vmatprep.mubr.bf16.mxu1 %v2261_v21 }
 0x2af   : > { %v2000_v26 = vpop.f32.mrb[0].mxu1 }
 0x2b0   : > { %v2001_v24 = vpop.f32.mrb[1].mxu1 }
 0x2b1   : > { %v2002_v61 = vadd.f32 %v2001_v24, %v2000_v26  ;;  %v2003_v25 = vpop.f32.mrb[2].mxu1 }
 0x2b2   : > { %v2004_v28 = vpop.f32.mrb[3].mxu1 }
 0x2b3   : > { %v1275_v29 = vadd.f32 %v2002_v61, %v1083_v27  ;;  %v2005_v31 = vadd.f32 %v2004_v28, %v2003_v25  ;;  %v1133_v28 = vpop.permute.xlu0 %1132 }
 0x2b5   : > { %v1278_v33 = vadd.f32 %v2005_v31, %v1088_v32  ;;  %v1337_v34 = vmax.f32 %v1275_v29, 0.0 }
 0x2b7   : > { %v1338_v37 = vmax.f32 %v1278_v33, 0.0  ;;  %v2006_v35 = vpop.f32.mrb[4].mxu1  ;;  %v1138_v33 = vpop.permute.xlu1 %1137 }
 0x2b8   : > { %v2007_v11 = vpop.f32.mrb[5].mxu1 }
 0x2b9   : > { %v2008_v38 = vadd.f32 %v2007_v11, %v2006_v35  ;;  %v2009_v40 = vpop.f32.mrb[6].mxu1  ;;  %v1353_v39 = vpack.c.bf16 %v1338_v37, %v1337_v34 }
 0x2ba   : > { %v2010_v43 = vpop.f32.mrb[7].mxu1 }
 0x2bb   : > { %v1283_v44 = vadd.f32 %v2008_v38, %v1093_v41  ;;  %v2011_v45 = vadd.f32 %v2010_v43, %v2009_v40  ;;  %2073 = vmatprep.subr.bf16.mxu1 %v1353_v39  ;;  %v1143_v43 = vpop.permute.xlu0 %1142 }
 0x2bc   : > { %2074 = vmatpush3.bf16.msra.mxu1 %v1353_v39 }
 0x2bd   : > { %v1286_v57 = vadd.f32 %v2011_v45, %v1098_v49  ;;  %v1339_v50 = vmax.f32 %v1283_v44, 0.0 }
 0x2bf   : > { %v1340_v30 = vmax.f32 %v1286_v57, 0.0  ;;  %v2012_v51 = vpop.f32.mrb[8].mxu1  ;;  %v1148_v57 = vpop.permute.xlu1 %1147 }
 0x2c0   : > { %v2013_v62 = vpop.f32.mrb[9].mxu1 }
 0x2c1   : > { %v2014_v52 = vadd.f32 %v2013_v62, %v2012_v51  ;;  %v2015_v53 = vpop.f32.mrb[10].mxu1  ;;  %v1354_v54 = vpack.c.bf16 %v1340_v30, %v1339_v50 }
 0x2c2   : > { %v2016_v56 = vpop.f32.mrb[11].mxu1 }
 0x2c3   : > { %v1291_v58 = vadd.f32 %v2014_v52, %v1103_v55  ;;  %v2017_v15 = vadd.f32 %v2016_v56, %v2015_v53  ;;  %2075 = vmatprep.subr.bf16.mxu1 %v1354_v54  ;;  %v1153_v56 = vpop.permute.xlu0 %1152 }
 0x2c4   : > { %2076 = vmatpush3.bf16.msra.mxu1 %v1354_v54 }
 0x2c5   : > { %v1294_v46 = vadd.f32 %v2017_v15, %v1108_v59  ;;  %v1341_v18 = vmax.f32 %v1291_v58, 0.0 }
 0x2c7   : > { %v1342_v17 = vmax.f32 %v1294_v46, 0.0  ;;  %v2018_v60 = vpop.f32.mrb[12].mxu1  ;;  %v1158_v46 = vpop.permute.xlu1 %1157 }
 0x2c8   : > { %v2019_v20 = vpop.f32.mrb[13].mxu1 }
 0x2c9   : > { %v2020_v63 = vadd.f32 %v2019_v20, %v2018_v60  ;;  %v2021_v1 = vpop.f32.mrb[14].mxu1  ;;  %v1355_v2 = vpack.c.bf16 %v1342_v17, %v1341_v18 }
 0x2ca   : > { %v2022_v42 = vpop.f32.mrb[15].mxu1 }
 0x2cb   : > { %v1299_v5 = vadd.f32 %v2020_v63, %v1113_v3  ;;  %v2023_v0 = vadd.f32 %v2022_v42, %v2021_v1  ;;  %2077 = vmatprep.subr.bf16.mxu1 %v1355_v2  ;;  %v2262_v63 = vld [vmem:[#allocation6 + $0x8] sm:$0xff]   ;;  %v2263_v1 = vld [vmem:[#allocation6 + $0x10] sm:$0xff]   ;;  %v2265_v3 = vld [vmem:[#allocation6 + $0x20] sm:$0xff]  }
 0x2cc   : > { %2078 = vmatpush3.bf16.msra.mxu1 %v1355_v2  ;;  %v2264_v2 = vld [vmem:[#allocation6 + $0x18] sm:$0xff]   ;;  %v2266_v42 = vld [vmem:[#allocation6 + $0x28] sm:$0xff]  }
 0x2cd   : > { %v1302_v48 = vadd.f32 %v2023_v0, %v1118_v7  ;;  %v1343_v22 = vmax.f32 %v1299_v5, 0.0  ;;  %v2267_v5 = vld [vmem:[#allocation6 + $0x30] sm:$0xff]   ;;  %v2268_v0 = vld [vmem:[#allocation6 + $0x38] sm:$0xff]   ;;  %v2393_v7 = vmov 0.0  }
 0x2cf   : > { %v1344_v8 = vmax.f32 %v1302_v48, 0.0  ;;  %v2024_v47 = vpop.f32.mrb[16].mxu1  ;;  %v1396_v48 = vpop.permute.xlu0 %1395 }
 0x2d0   : > { %v2025_v4 = vpop.f32.mrb[17].mxu1 }
 0x2d1   : > { %v2026_v9 = vadd.f32 %v2025_v4, %v2024_v47  ;;  %v2027_v14 = vpop.f32.mrb[18].mxu1  ;;  %v1356_v6 = vpack.c.bf16 %v1344_v8, %v1343_v22  ;;  %v1401_v22 = vpop.permute.xlu1 %1400 }
 0x2d2   : > { %v2028_v10 = vpop.f32.mrb[19].mxu1 }
 0x2d3   : > { %v1307_v36 = vadd.f32 %v2026_v9, %v1123_v23  ;;  %v2029_v12 = vadd.f32 %v2028_v10, %v2027_v14  ;;  %2079 = vmatprep.subr.bf16.mxu1 %v1356_v6  ;;  %v1406_v8 = vpop.permute.xlu0 %1405 }
 0x2d4   : > { %2080 = vmatpush3.bf16.msra.mxu1 %v1356_v6 }
 0x2d5   : > { %v1310_v16 = vadd.f32 %v2029_v12, %v1128_v13  ;;  %v1345_v19 = vmax.f32 %v1307_v36, 0.0  ;;  %v1411_v47 = vpop.permute.xlu1 %1410 }
 0x2d7   : > { %v1346_v21 = vmax.f32 %v1310_v16, 0.0  ;;  %v2030_v26 = vpop.f32.mrb[20].mxu1  ;;  %v1416_v4 = vpop.permute.xlu0 %1415 }
 0x2d8   : > { %v2031_v24 = vpop.f32.mrb[21].mxu1 }
 0x2d9   : > { %v2032_v61 = vadd.f32 %v2031_v24, %v2030_v26  ;;  %v2033_v25 = vpop.f32.mrb[22].mxu1  ;;  %v1357_v27 = vpack.c.bf16 %v1346_v21, %v1345_v19  ;;  %v1421_v9 = vpop.permute.xlu1 %1420 }
 0x2da   : > { %v2034_v29 = vpop.f32.mrb[23].mxu1 }
 0x2db   : > { %v1315_v31 = vadd.f32 %v2032_v61, %v1133_v28  ;;  %v2035_v32 = vadd.f32 %v2034_v29, %v2033_v25  ;;  %2081 = vmatprep.subr.bf16.mxu1 %v1357_v27  ;;  %v1426_v14 = vpop.permute.xlu0 %1425 }
 0x2dc   : > { %2082 = vmatpush3.bf16.msra.mxu1 %v1357_v27 }
 0x2dd   : > { %v1318_v34 = vadd.f32 %v2035_v32, %v1138_v33  ;;  %v1347_v37 = vmax.f32 %v1315_v31, 0.0  ;;  %v1431_v36 = vpop.permute.xlu1 %1430 }
 0x2df   : > { %v1348_v35 = vmax.f32 %v1318_v34, 0.0  ;;  %v2036_v11 = vpop.f32.mrb[24].mxu1  ;;  %v1436_v61 = vpop.permute.xlu0 %1435 }
 0x2e0   : > { %v2037_v38 = vpop.f32.mrb[25].mxu1 }
 0x2e1   : > { %v2038_v40 = vadd.f32 %v2037_v38, %v2036_v11  ;;  %v2039_v39 = vpop.f32.mrb[26].mxu1  ;;  %v1358_v41 = vpack.c.bf16 %v1348_v35, %v1347_v37  ;;  %v1441_v29 = vpop.permute.xlu1 %1440 }
 0x2e2   : > { %v2040_v44 = vpop.f32.mrb[27].mxu1 }
 0x2e3   : > { %v1323_v45 = vadd.f32 %v2038_v40, %v1143_v43  ;;  %v2041_v49 = vadd.f32 %v2040_v44, %v2039_v39  ;;  %2083 = vmatprep.subr.bf16.mxu1 %v1358_v41  ;;  %v1446_v40 = vpop.permute.xlu0 %1445 }
 0x2e4   : > { %2084 = vmatpush3.bf16.msra.mxu1 %v1358_v41 }
 0x2e5   : > { %v1326_v50 = vadd.f32 %v2041_v49, %v1148_v57  ;;  %v1349_v30 = vmax.f32 %v1323_v45, 0.0  ;;  %v1451_v44 = vpop.permute.xlu1 %1450 }
 0x2e7   : > { %v1350_v51 = vmax.f32 %v1326_v50, 0.0  ;;  %v2042_v62 = vpop.f32.mrb[28].mxu1 }
 0x2e8   : > { %v2043_v52 = vpop.f32.mrb[29].mxu1 }
 0x2e9   : > { %v2044_v53 = vadd.f32 %v2043_v52, %v2042_v62  ;;  %v2045_v54 = vpop.f32.mrb[30].mxu1  ;;  %v1359_v55 = vpack.c.bf16 %v1350_v51, %v1349_v30  ;;  %v1456_v52 = vpop.permute.xlu0 %1455 }
 0x2ea   : > { %v2046_v58 = vpop.f32.mrb[31].mxu1 }
 0x2eb   : > { %v1331_v15 = vadd.f32 %v2044_v53, %v1153_v56  ;;  %v2047_v59 = vadd.f32 %v2046_v58, %v2045_v54  ;;  %2085 = vmatprep.subr.bf16.mxu1 %v1359_v55  ;;  %v1461_v58 = vpop.permute.xlu1 %1460 }
 0x2ec   : > { %2086 = vmatpush3.bf16.msra.mxu1 %v1359_v55 }
 0x2ed   : > { %v1334_v18 = vadd.f32 %v2047_v59, %v1158_v46  ;;  %v1351_v17 = vmax.f32 %v1331_v15, 0.0 }
 0x2ef   : > { %v1352_v60 = vmax.f32 %v1334_v18, 0.0 }
 0x2f1   : > { %v1360_v20 = vpack.c.bf16 %v1352_v60, %v1351_v17 }
 0x2f3   : > { %2087 = vmatprep.subr.bf16.mxu1 %v1360_v20 }
 0x2f4   : > { %2088 = vmatpush3.bf16.msra.mxu1 %v1360_v20  ;;  %v1466_v20 = vpop.permute.xlu0 %1465 }
 0x2f5   : > { %2105 = vmatprep.subr.bf16.mxu1 %v2393_v7 }
 0x2f7   : > { %2090 = vmatmul.mubr.bf16.vlgmr.msra.gmra.mrb[32].mxu1 %v2262_v63 }
 0x2f8   : > { %2093 = vmatprep.mubr.bf16.mxu1 %v2263_v1 }
 0x2ff   : > { %2094 = vmatmul.mubr.bf16.gmra.mrb[36].mxu1 %v2264_v2 }
 0x300   : > { %2097 = vmatprep.mubr.bf16.mxu1 %v2265_v3 }
 0x307   : > { %2098 = vmatmul.mubr.bf16.gmra.mrb[40].mxu1 %v2266_v42  ;;  %v1471_v42 = vpop.permute.xlu1 %1470 }
 0x308   : > { %2101 = vmatprep.mubr.bf16.mxu1 %v2267_v5 }
 0x30f   : > { %2102 = vmatmul.mubr.bf16.gmra.mrb[44].mxu1 %v2268_v0 }
 0x310   : > { %2121 = vmatprep.mubr.msk.bf16.mxu1 %vm2394_vm0, %v2393_v7 }
 0x3ca   : > { %v2091_v6 = vpop.f32.mrb[32].mxu1 }
 0x3cb   : > { %v1564_v23 = vadd.f32 %v2091_v6, %v1406_v8  ;;  %v1555_v10 = vpop.f32.mrb[33].mxu1 }
 0x3cc   : > { %v1556_v12 = vadd.f32 %v1555_v10, %v1396_v48  ;;  %v2092_v13 = vpop.f32.mrb[34].mxu1  ;;  %v1642_v10 = vld [vmem:[%s2906_s7] sm:$0x3] }
 0x3cd   : > { %v1567_v16 = vadd.f32 %v2092_v13, %v1411_v47  ;;  %v1558_v19 = vpop.f32.mrb[35].mxu1  ;;  %v1620_v26 = vmax.f32 %v1564_v23, 0.0 }
 0x3ce   : > { %v1559_v21 = vadd.f32 %v1558_v19, %v1401_v22  ;;  %v1618_v25 = vmax.f32 %v1556_v12, 0.0 }
 0x3cf   : > { %v1621_v24 = vmax.f32 %v1567_v16, 0.0 }
 0x3d0   : > { %v1619_v27 = vmax.f32 %v1559_v21, 0.0 }
 0x3d1   : > { %v1635_v28 = vpack.c.bf16 %v1621_v24, %v1620_v26 }
 0x3d2   : > { %v1634_v31 = vpack.c.bf16 %v1619_v27, %v1618_v25  ;;  %v2095_v32 = vpop.f32.mrb[36].mxu1 }
 0x3d3   : > { %v1580_v33 = vadd.f32 %v2095_v32, %v1426_v14  ;;  %v1571_v34 = vpop.f32.mrb[37].mxu1 }
 0x3d4   : > { %v1572_v37 = vadd.f32 %v1571_v34, %v1416_v4  ;;  %v2096_v35 = vpop.f32.mrb[38].mxu1  ;;  %2106 = vmatpush3.bf16.msra.mxu1 %v1634_v31 }
 0x3d5   : > { %v1583_v11 = vadd.f32 %v2096_v35, %v1431_v36  ;;  %v1574_v38 = vpop.f32.mrb[39].mxu1  ;;  %2107 = vmatprep.subr.bf16.mxu1 %v2393_v7  ;;  %v1624_v41 = vmax.f32 %v1580_v33, 0.0  ;;  %v1647_v36 = vpop.permute.xlu0 %1646 }
 0x3d6   : > { %v1575_v39 = vadd.f32 %v1574_v38, %v1421_v9  ;;  %v1622_v45 = vmax.f32 %v1572_v37, 0.0 }
 0x3d7   : > { %v1625_v43 = vmax.f32 %v1583_v11, 0.0 }
 0x3d8   : > { %v1623_v49 = vmax.f32 %v1575_v39, 0.0  ;;  %2108 = vmatpush3.bf16.msra.mxu1 %v1635_v28 }
 0x3d9   : > { %v1637_v57 = vpack.c.bf16 %v1625_v43, %v1624_v41  ;;  %2109 = vmatprep.subr.bf16.mxu1 %v2393_v7 }
 0x3da   : > { %v1636_v50 = vpack.c.bf16 %v1623_v49, %v1622_v45  ;;  %v2099_v30 = vpop.f32.mrb[40].mxu1 }
 0x3db   : > { %v1596_v51 = vadd.f32 %v2099_v30, %v1446_v40  ;;  %v1587_v62 = vpop.f32.mrb[41].mxu1 }
 0x3dc   : > { %v1588_v53 = vadd.f32 %v1587_v62, %v1436_v61  ;;  %v2100_v54 = vpop.f32.mrb[42].mxu1  ;;  %2110 = vmatpush3.bf16.msra.mxu1 %v1636_v50 }
 0x3dd   : > { %v1599_v55 = vadd.f32 %v2100_v54, %v1451_v44  ;;  %v1590_v56 = vpop.f32.mrb[43].mxu1  ;;  %2111 = vmatprep.subr.bf16.mxu1 %v2393_v7  ;;  %v1628_v59 = vmax.f32 %v1596_v51, 0.0 }
 0x3de   : > { %v1591_v15 = vadd.f32 %v1590_v56, %v1441_v29  ;;  %v1626_v18 = vmax.f32 %v1588_v53, 0.0 }
 0x3df   : > { %v1629_v46 = vmax.f32 %v1599_v55, 0.0 }
 0x3e0   : > { %v1627_v17 = vmax.f32 %v1591_v15, 0.0  ;;  %2112 = vmatpush3.bf16.msra.mxu1 %v1637_v57 }
 0x3e1   : > { %v1639_v60 = vpack.c.bf16 %v1629_v46, %v1628_v59  ;;  %2113 = vmatprep.subr.bf16.mxu1 %v2393_v7 }
 0x3e2   : > { %v1638_v63 = vpack.c.bf16 %v1627_v17, %v1626_v18  ;;  %v2103_v1 = vpop.f32.mrb[44].mxu1 }
 0x3e3   : > { %v1612_v2 = vadd.f32 %v2103_v1, %v1466_v20  ;;  %v1603_v3 = vpop.f32.mrb[45].mxu1 }
 0x3e4   : > { %v1604_v5 = vadd.f32 %v1603_v3, %v1456_v52  ;;  %v2104_v0 = vpop.f32.mrb[46].mxu1  ;;  %2114 = vmatpush3.bf16.msra.mxu1 %v1638_v63 }
 0x3e5   : > { %v1615_v48 = vadd.f32 %v2104_v0, %v1471_v42  ;;  %v1606_v22 = vpop.f32.mrb[47].mxu1  ;;  %2115 = vmatprep.subr.bf16.mxu1 %v2393_v7  ;;  %v1632_v47 = vmax.f32 %v1612_v2, 0.0 }
 0x3e6   : > { %v1607_v8 = vadd.f32 %v1606_v22, %v1461_v58  ;;  %v1630_v9 = vmax.f32 %v1604_v5, 0.0 }
 0x3e7   : > { %v1633_v4 = vmax.f32 %v1615_v48, 0.0 }
 0x3e8   : > { %v1631_v14 = vmax.f32 %v1607_v8, 0.0  ;;  %2116 = vmatpush3.bf16.msra.mxu1 %v1639_v60 }
 0x3e9   : > { %v1641_v6 = vpack.c.bf16 %v1633_v4, %v1632_v47  ;;  %2117 = vmatprep.subr.bf16.mxu1 %v2393_v7 }
 0x3ea   : > { %v1640_v23 = vpack.c.bf16 %v1631_v14, %v1630_v9 }
 0x3ec   : > { %2118 = vmatpush3.bf16.msra.mxu1 %v1640_v23 }
 0x3ed   : > { %2119 = vmatprep.subr.bf16.mxu1 %v2393_v7 }
 0x3f0   : > { %2120 = vmatpush3.bf16.msra.mxu1 %v1641_v6 }
 0x3f3   : > { %2122 = vmatmul.mubr.bf16.vlgmr.msra.gmra.mrb[48].mxu1 %v1642_v10 }
 0x4c6   : > { %v1683_v12 = vpop.f32.mrb[48].mxu1 }
 0x4c7   : > { %v1684_v13 = vadd.f32 %v1683_v12, %v1647_v36  ;;  %v2123_v16 = vpop.f32.mrb[49].mxu1 }
 0x4c8   : > { %v1686_v19 = vpop.f32.mrb[50].mxu1 }
 0x4c9   : > { %1689 = vst [vmem:[%s405_s21] sm:$0x7] %v1684_v13  ;;  %v2124_v21 = vpop.f32.mrb[51].mxu1 }
 0x4ca PF: > { %s21_s11 = sadd.s32 1, %s2383_s11   ;;  %s2921_s30 = sld [smem:[#allocation9_spill]] }
 0x4cb   : > { %p18_p5 = scmp.ge.s32.totalorder %s21_s11, 4   ;;  %s2922_s10 = smov %s2924_s18 }
 0x4cd   :  { %20 = sbr.rel (!%p18_p5) target bundleno = 3 (0x3), region = 99 }
 0x4d4   :  { %1715 = vsyncpa [#allocation3], 1 }
 0x4d5   :  { %1717 = vsyncpa [#allocation3 + $0x1], 1 }
 0x4d6   :  { %1718 = vsyncpa [#allocation5], 1 }

</bundles_post_ra>
